<compile_context>
chip_gen: v6e
topology: v6e:2x2x1
jax: 0.10.0
libtpu: 0.0.40
codegen_flags: <defaults>
</compile_context>

<pallas_src>
import functools

import jax
import jax.numpy as jnp
from jax import lax
from jax.experimental import pallas as pl
from jax.experimental.pallas import tpu as pltpu


def _layernorm(x, w, b, eps=1e-5):
    mu = jnp.mean(x, axis=-1, keepdims=True)
    xc = x - mu
    var = jnp.mean(xc * xc, axis=-1, keepdims=True)
    return xc * lax.rsqrt(var + eps) * w + b


def _fast_recip(x):
    # EUP approximate reciprocal + one Newton step → ~full f32 accuracy,
    # no VALU divide.
    r = pl.reciprocal(x, approx=True)
    return r * (2.0 - x * r)


def belief_kernel(signal_ref, belief0_ref, wp_ref, bppos_ref,
                  wq_ref, bq_ref, wk_ref, bk_ref, wv_ref, bv_ref,
                  wo_ref, bo_ref,
                  w1_ref, b1_ref, w2_ref, b2_ref,
                  ln1w_ref, ln1b_ref, ln2w_ref, ln2b_ref,
                  wh_ref, bh_ref, hmask_ref, hmask_t_ref,
                  out_ref,
                  *, num_layers):
    B = signal_ref.shape[0]
    D = wp_ref.shape[1]
    K = wh_ref.shape[1]
    f32 = jnp.float32
    bf16 = jnp.bfloat16

    # Constant per-head masks (scale folded into hmask), passed from wrapper.
    hmask = hmask_ref[...]          # [D, nhead] bf16, entries = 1/sqrt(Hd)
    hmask_t = hmask_t_ref[...]      # [nhead, D] bf16, entries = 1

    # --- signal projection + (bias + positional encoding, pre-fused) -------
    proj = jnp.dot(signal_ref[...].astype(bf16), wp_ref[...],
                   preferred_element_type=f32)
    proj = proj + bppos_ref[...]                                   # [B, D]

    # sequence flattened on sublanes: rows [0, B) = prior-belief context
    # (seq pos 0), rows [B, 2B) = projected signal (seq pos 1).
    x = jnp.concatenate([belief0_ref[...], proj], axis=0)          # [2B, D]

    # --- post-norm TransformerEncoder layers (dropout = identity) ----------
    for l in range(num_layers):
        xb = x.astype(bf16)
        q = jnp.dot(xb, wq_ref[l], preferred_element_type=f32) + bq_ref[l]
        k = jnp.dot(xb, wk_ref[l], preferred_element_type=f32) + bk_ref[l]
        v = jnp.dot(xb, wv_ref[l], preferred_element_type=f32) + bv_ref[l]
        # per-row "other sequence position": single XLU sublane rotate
        k_other = pltpu.roll(k, shift=B, axis=0)
        v_other = pltpu.roll(v, shift=B, axis=0)

        # fused per-head score reduce for both key positions: one MXU matmul
        # (scale already folded into hmask)
        qk_both = jnp.concatenate([q * k, q * k_other], axis=0).astype(bf16)
        s_both = jnp.dot(qk_both, hmask, preferred_element_type=f32)  # [4B, nh]
        s_self, s_other = s_both[:2 * B], s_both[2 * B:]

        # softmax over the two key positions, per row / per head
        m = jnp.maximum(s_self, s_other)
        e_self = jnp.exp(s_self - m)
        e_other = jnp.exp(s_other - m)
        inv = _fast_recip(e_self + e_other)

        # fused lane broadcast of both prob sets: one MXU matmul
        p_both = jnp.concatenate([e_self * inv, e_other * inv],
                                 axis=0).astype(bf16)                 # [4B, nh]
        w_both = jnp.dot(p_both, hmask_t, preferred_element_type=f32)  # [4B, D]
        attn = w_both[:2 * B] * v + w_both[2 * B:] * v_other

        attn = jnp.dot(attn.astype(bf16), wo_ref[l],
                       preferred_element_type=f32) + bo_ref[l]
        x = _layernorm(x + attn, ln1w_ref[l], ln1b_ref[l])

        hdn = jnp.dot(x.astype(bf16), w1_ref[l],
                      preferred_element_type=f32) + b1_ref[l]
        hdn = jnp.maximum(hdn, 0.0)
        ff = jnp.dot(hdn.astype(bf16), w2_ref[l],
                     preferred_element_type=f32) + b2_ref[l]
        x = _layernorm(x + ff, ln2w_ref[l], ln2b_ref[l])

    # --- belief head on last sequence position -----------------------------
    last = x[B:]                                                    # [B, D]
    logits = jnp.dot(last.astype(bf16), wh_ref[...],
                     preferred_element_type=f32) + bh_ref[...]
    lm = jnp.max(logits, axis=-1, keepdims=True)
    e = jnp.exp(logits - lm)
    dist = e * _fast_recip(jnp.sum(e, axis=-1, keepdims=True))      # [B, K]

    # single lane-dense store: belief in lanes [0, D), dist in [D, D+K)
    slab_w = out_ref.shape[1]
    if slab_w > D + K:
        pad = jnp.zeros((B, slab_w - D - K), f32)
        out_ref[...] = jnp.concatenate([last, dist, pad], axis=-1)
    else:
        out_ref[...] = jnp.concatenate([last, dist], axis=-1)


def transformer_belief_forward(signal, current_belief, params, *, nhead,
                               num_layers, b_tile=None):
    B, K = signal.shape
    D = params["wp_t"].shape[1]
    assert D % nhead == 0, "hidden_dim must be divisible by nhead"
    if b_tile is None:
        # >= 2 parallel grid steps when possible so both TensorCores are used
        # on v7x; keep the tile a multiple of 8 (sublane-aligned output block).
        b_tile = B // 2 if (B >= 16 and B % 16 == 0) else B
    assert B % b_tile == 0, "b_tile must divide the batch (no silent remainder)"
    assert b_tile % 8 == 0 or b_tile == B, "b_tile must be 8-aligned"
    grid = (B // b_tile,)
    slab_w = ((D + K + 127) // 128) * 128

    # constant per-head one-hot masks with the attention scale folded in
    Hd = D // nhead
    scale = 1.0 / (Hd ** 0.5)
    d_idx = jnp.arange(D)[:, None]
    h_idx = jnp.arange(nhead)[None, :]
    hmask = jnp.where(d_idx // Hd == h_idx, scale, 0.0).astype(jnp.bfloat16)
    hmask_t = (h_idx.T == (d_idx.T // Hd)).astype(jnp.bfloat16)     # [nhead, D]
    # projection bias + positional encoding fused once outside the kernel
    bppos = (params["bp"] + params["pos"]).astype(jnp.float32)      # [1, D]

    def full_spec(a):
        n = a.ndim
        return pl.BlockSpec(a.shape, lambda i, _n=n: (0,) * _n)

    in_arrays = [signal, current_belief,
                 params["wp_t"], bppos,
                 params["wq_t"], params["bq"], params["wk_t"], params["bk"],
                 params["wv_t"], params["bv"],
                 params["wo_t"], params["bo"],
                 params["w1_t"], params["b1"], params["w2_t"], params["b2"],
                 params["ln1w"], params["ln1b"], params["ln2w"], params["ln2b"],
                 params["wh_t"], params["bh"], hmask, hmask_t]

    in_specs = [pl.BlockSpec((b_tile, K), lambda i: (i, 0)),
                pl.BlockSpec((b_tile, D), lambda i: (i, 0))] + \
               [full_spec(a) for a in in_arrays[2:]]
    out_specs = pl.BlockSpec((b_tile, slab_w), lambda i: (i, 0))
    out_shape = jax.ShapeDtypeStruct((B, slab_w), jnp.float32)

    # TODO(synk): for large D / num_layers, stream weights per layer (layer-wise
    # grid axis or emit_pipeline) instead of keeping the whole stack resident.
    slab = pl.pallas_call(
        functools.partial(belief_kernel, num_layers=num_layers),
        grid=grid,
        in_specs=in_specs,
        out_specs=out_specs,
        out_shape=out_shape,
        compiler_params=pltpu.CompilerParams(
            dimension_semantics=("parallel",),
            vmem_limit_bytes=64 * 1024 * 1024),
    )(*in_arrays)

    new_belief = slab[:, :D][None, :, :]     # standardized belief: [1, B, D]
    dist = slab[:, D:D + K]
    return new_belief, dist


def init_params(key, *, hidden_dim, num_belief_states, num_layers):
    D, K, L = hidden_dim, num_belief_states, num_layers
    ks = jax.random.split(key, 10)
    bf16, f32 = jnp.bfloat16, jnp.float32

    def rnd(k, shape, std, dtype):
        return (std * jax.random.normal(k, shape, f32)).astype(dtype)

    return {
        # signal_only_projection (xavier_normal), stored transposed [K, D], bf16
        "wp_t": rnd(ks[0], (K, D), (2.0 / (K + D)) ** 0.5, bf16),
        "bp": jnp.zeros((1, D), f32),
        # pos_encoder ~ N(0, 0.02)
        "pos": rnd(ks[1], (1, D), 0.02, f32),
        # per-layer attention (split q/k/v), FFN (bf16 matmul weights),
        # biases / LayerNorm params in f32, all stacked over layers.
        "wq_t": rnd(ks[2], (L, D, D), (1.0 / D) ** 0.5, bf16),
        "bq": jnp.zeros((L, 1, D), f32),
        "wk_t": rnd(ks[3], (L, D, D), (1.0 / D) ** 0.5, bf16),
        "bk": jnp.zeros((L, 1, D), f32),
        "wv_t": rnd(ks[4], (L, D, D), (1.0 / D) ** 0.5, bf16),
        "bv": jnp.zeros((L, 1, D), f32),
        "wo_t": rnd(ks[5], (L, D, D), (1.0 / D) ** 0.5, bf16),
        "bo": jnp.zeros((L, 1, D), f32),
        "w1_t": rnd(ks[6], (L, D, 4 * D), (1.0 / D) ** 0.5, bf16),
        "b1": jnp.zeros((L, 1, 4 * D), f32),
        "w2_t": rnd(ks[7], (L, 4 * D, D), (1.0 / (4 * D)) ** 0.5, bf16),
        "b2": jnp.zeros((L, 1, D), f32),
        "ln1w": jnp.ones((L, 1, D), f32),
        "ln1b": jnp.zeros((L, 1, D), f32),
        "ln2w": jnp.ones((L, 1, D), f32),
        "ln2b": jnp.zeros((L, 1, D), f32),
        # belief_head (xavier_normal), stored transposed [D, K], bf16
        "wh_t": rnd(ks[8], (D, K), (2.0 / (D + K)) ** 0.5, bf16),
        "bh": jnp.zeros((1, K), f32),
    }


def reference_forward(signal, belief0, p, *, nhead, num_layers):
    """Pure-JAX f32 reference with identical math (eval-mode PyTorch semantics).

    bf16 weights are promoted to f32 inside the matmuls, so the only
    divergence from the kernel is the kernel's bf16 MXU operand casts.
    """
    B, _ = signal.shape
    D = p["wp_t"].shape[1]
    Hd = D // nhead
    proj = signal @ p["wp_t"].astype(jnp.float32) + p["bp"] + p["pos"]
    x = jnp.stack([belief0, proj], axis=1)                          # [B, 2, D]
    for l in range(num_layers):
        q = x @ p["wq_t"][l].astype(jnp.float32) + p["bq"][l]
        k = x @ p["wk_t"][l].astype(jnp.float32) + p["bk"][l]
        v = x @ p["wv_t"][l].astype(jnp.float32) + p["bv"][l]
        q = q.reshape(B, 2, nhead, Hd).transpose(0, 2, 1, 3)
        k = k.reshape(B, 2, nhead, Hd).transpose(0, 2, 1, 3)
        v = v.reshape(B, 2, nhead, Hd).transpose(0, 2, 1, 3)
        s = jnp.einsum("bhqd,bhkd->bhqk", q, k) / (Hd ** 0.5)
        a = jnp.einsum("bhqk,bhkd->bhqd", jax.nn.softmax(s, axis=-1), v)
        a = a.transpose(0, 2, 1, 3).reshape(B, 2, D)
        a = a @ p["wo_t"][l].astype(jnp.float32) + p["bo"][l]
        x = _layernorm(x + a, p["ln1w"][l], p["ln1b"][l])
        ff = jnp.maximum(x @ p["w1_t"][l].astype(jnp.float32) + p["b1"][l], 0.0)
        ff = ff @ p["w2_t"][l].astype(jnp.float32) + p["b2"][l]
        x = _layernorm(x + ff, p["ln2w"][l], p["ln2b"][l])
    last = x[:, 1, :]
    logits = last @ p["wh_t"].astype(jnp.float32) + p["bh"]
    return last[None], jax.nn.softmax(logits, axis=-1)


if __name__ == "__main__":
    HIDDEN_DIM = 32
    NUM_BELIEF_STATES = 4
    NHEAD = 4
    NUM_LAYERS = 2
    BATCH = 16

    key = jax.random.PRNGKey(0)
    kp, ks, kb = jax.random.split(key, 3)
    params = init_params(kp, hidden_dim=HIDDEN_DIM,
                         num_belief_states=NUM_BELIEF_STATES,
                         num_layers=NUM_LAYERS)

    # discrete signal path: a distribution over belief states per batch element
    signal = jax.nn.softmax(
        jax.random.normal(ks, (BATCH, NUM_BELIEF_STATES), jnp.float32), axis=-1)
    current_belief = 0.1 * jax.random.normal(kb, (BATCH, HIDDEN_DIM), jnp.float32)

    new_belief, dist = transformer_belief_forward(
        signal, current_belief, params,
        nhead=NHEAD, num_layers=NUM_LAYERS)   # default b_tile=B//2 → grid=(2,)
    jax.block_until_ready((new_belief, dist))

    ref_belief, ref_dist = reference_forward(
        signal, current_belief, params, nhead=NHEAD, num_layers=NUM_LAYERS)

    assert new_belief.shape == (1, BATCH, HIDDEN_DIM)
    assert dist.shape == (BATCH, NUM_BELIEF_STATES)
    # kernel uses bf16 MXU operands (f32 accumulation) → loose tolerance vs
    # the f32 reference.
    assert jnp.allclose(new_belief[0], ref_belief[0], atol=5e-2, rtol=5e-2)
    assert jnp.allclose(dist, ref_dist, atol=5e-2, rtol=5e-2)
    assert jnp.allclose(jnp.sum(dist, axis=-1), 1.0, atol=1e-3)
    # TODO(synk): dropout (p=0.1) is only active in training mode; eval-mode
    # (identity) semantics are implemented here.
    # TODO(synk): continuous-signal branch (signal dim == 1) is a Python-level
    # branch in the PyTorch module; only the discrete-signal path is kernelized.
    # TODO(synk): for very small D a lane-packed [B, 2*D] activation layout
    # (block-diagonal weights) would double lane/MXU occupancy; not applied.
    print("KERNEL_OK")
</pallas_src>

<mosaic_0001>
module attributes {stable_mosaic.version = 11 : i64} {
  func.func @belief_kernel(%arg0: i32, %arg1: memref<8x4xf32, #tpu.memory_space<vmem>>, %arg2: memref<8x32xf32, #tpu.memory_space<vmem>>, %arg3: memref<4x32xbf16, #tpu.memory_space<vmem>>, %arg4: memref<1x32xf32, #tpu.memory_space<vmem>>, %arg5: memref<2x32x32xbf16, #tpu.memory_space<vmem>>, %arg6: memref<2x1x32xf32, #tpu.memory_space<vmem>>, %arg7: memref<2x32x32xbf16, #tpu.memory_space<vmem>>, %arg8: memref<2x1x32xf32, #tpu.memory_space<vmem>>, %arg9: memref<2x32x32xbf16, #tpu.memory_space<vmem>>, %arg10: memref<2x1x32xf32, #tpu.memory_space<vmem>>, %arg11: memref<2x32x32xbf16, #tpu.memory_space<vmem>>, %arg12: memref<2x1x32xf32, #tpu.memory_space<vmem>>, %arg13: memref<2x32x128xbf16, #tpu.memory_space<vmem>>, %arg14: memref<2x1x128xf32, #tpu.memory_space<vmem>>, %arg15: memref<2x128x32xbf16, #tpu.memory_space<vmem>>, %arg16: memref<2x1x32xf32, #tpu.memory_space<vmem>>, %arg17: memref<2x1x32xf32, #tpu.memory_space<vmem>>, %arg18: memref<2x1x32xf32, #tpu.memory_space<vmem>>, %arg19: memref<2x1x32xf32, #tpu.memory_space<vmem>>, %arg20: memref<2x1x32xf32, #tpu.memory_space<vmem>>, %arg21: memref<32x4xbf16, #tpu.memory_space<vmem>>, %arg22: memref<1x4xf32, #tpu.memory_space<vmem>>, %arg23: memref<32x4xbf16, #tpu.memory_space<vmem>>, %arg24: memref<4x32xbf16, #tpu.memory_space<vmem>>, %arg25: memref<8x128xf32, #tpu.memory_space<vmem>>) attributes {dimension_semantics = [#tpu.dimension_semantics<parallel>], iteration_bounds = array<i64: 2>, scalar_prefetch = 0 : i64, scratch_operands = 0 : i64, tpu.core_type = #tpu.core_type<tc>, window_params = [{transform_indices = @transform_0, window_bounds = array<i64: 8, 4>}, {transform_indices = @transform_1, window_bounds = array<i64: 8, 32>}, {pipeline_mode = #tpu.pipeline_mode<synchronous>, transform_indices = @transform_2, window_bounds = array<i64: 4, 32>}, {pipeline_mode = #tpu.pipeline_mode<synchronous>, transform_indices = @transform_3, window_bounds = array<i64: 1, 32>}, {pipeline_mode = #tpu.pipeline_mode<synchronous>, transform_indices = @transform_4, window_bounds = array<i64: 2, 32, 32>}, {pipeline_mode = #tpu.pipeline_mode<synchronous>, transform_indices = @transform_5, window_bounds = array<i64: 2, 1, 32>}, {pipeline_mode = #tpu.pipeline_mode<synchronous>, transform_indices = @transform_6, window_bounds = array<i64: 2, 32, 32>}, {pipeline_mode = #tpu.pipeline_mode<synchronous>, transform_indices = @transform_7, window_bounds = array<i64: 2, 1, 32>}, {pipeline_mode = #tpu.pipeline_mode<synchronous>, transform_indices = @transform_8, window_bounds = array<i64: 2, 32, 32>}, {pipeline_mode = #tpu.pipeline_mode<synchronous>, transform_indices = @transform_9, window_bounds = array<i64: 2, 1, 32>}, {pipeline_mode = #tpu.pipeline_mode<synchronous>, transform_indices = @transform_10, window_bounds = array<i64: 2, 32, 32>}, {pipeline_mode = #tpu.pipeline_mode<synchronous>, transform_indices = @transform_11, window_bounds = array<i64: 2, 1, 32>}, {pipeline_mode = #tpu.pipeline_mode<synchronous>, transform_indices = @transform_12, window_bounds = array<i64: 2, 32, 128>}, {pipeline_mode = #tpu.pipeline_mode<synchronous>, transform_indices = @transform_13, window_bounds = array<i64: 2, 1, 128>}, {pipeline_mode = #tpu.pipeline_mode<synchronous>, transform_indices = @transform_14, window_bounds = array<i64: 2, 128, 32>}, {pipeline_mode = #tpu.pipeline_mode<synchronous>, transform_indices = @transform_15, window_bounds = array<i64: 2, 1, 32>}, {pipeline_mode = #tpu.pipeline_mode<synchronous>, transform_indices = @transform_16, window_bounds = array<i64: 2, 1, 32>}, {pipeline_mode = #tpu.pipeline_mode<synchronous>, transform_indices = @transform_17, window_bounds = array<i64: 2, 1, 32>}, {pipeline_mode = #tpu.pipeline_mode<synchronous>, transform_indices = @transform_18, window_bounds = array<i64: 2, 1, 32>}, {pipeline_mode = #tpu.pipeline_mode<synchronous>, transform_indices = @transform_19, window_bounds = array<i64: 2, 1, 32>}, {pipeline_mode = #tpu.pipeline_mode<synchronous>, transform_indices = @transform_20, window_bounds = array<i64: 32, 4>}, {pipeline_mode = #tpu.pipeline_mode<synchronous>, transform_indices = @transform_21, window_bounds = array<i64: 1, 4>}, {pipeline_mode = #tpu.pipeline_mode<synchronous>, transform_indices = @transform_22, window_bounds = array<i64: 32, 4>}, {pipeline_mode = #tpu.pipeline_mode<synchronous>, transform_indices = @transform_23, window_bounds = array<i64: 4, 32>}, {transform_indices = @transform_24, window_bounds = array<i64: 8, 128>}]} {
    %c0 = arith.constant 0 : index
    %c0_0 = arith.constant 0 : index
    %0 = vector.load %arg23[%c0, %c0_0] : memref<32x4xbf16, #tpu.memory_space<vmem>>, vector<32x4xbf16>
    %c0_1 = arith.constant 0 : index
    %c0_2 = arith.constant 0 : index
    %1 = vector.load %arg24[%c0_1, %c0_2] : memref<4x32xbf16, #tpu.memory_space<vmem>>, vector<4x32xbf16>
    %c0_3 = arith.constant 0 : index
    %c0_4 = arith.constant 0 : index
    %2 = vector.load %arg1[%c0_3, %c0_4] : memref<8x4xf32, #tpu.memory_space<vmem>>, vector<8x4xf32>
    %3 = arith.truncf %2 : vector<8x4xf32> to vector<8x4xbf16>
    %c0_5 = arith.constant 0 : index
    %c0_6 = arith.constant 0 : index
    %4 = vector.load %arg3[%c0_5, %c0_6] : memref<4x32xbf16, #tpu.memory_space<vmem>>, vector<4x32xbf16>
    %cst = arith.constant dense<0.000000e+00> : vector<8x32xf32>
    %5 = tpu.matmul %3, %4, %cst {dimension_numbers = #tpu.dot_dimension_numbers<[1], [0], [0], [1], [0, 0, 1, 1], [], []>} : vector<8x4xbf16>, vector<4x32xbf16>, vector<8x32xf32> -> vector<8x32xf32>
    %c0_7 = arith.constant 0 : index
    %c0_8 = arith.constant 0 : index
    %6 = vector.load %arg4[%c0_7, %c0_8] : memref<1x32xf32, #tpu.memory_space<vmem>>, vector<1x32xf32>
    %7 = vector.broadcast %6 : vector<1x32xf32> to vector<8x32xf32>
    %8 = arith.addf %5, %7 : vector<8x32xf32>
    %c0_9 = arith.constant 0 : index
    %c0_10 = arith.constant 0 : index
    %9 = vector.load %arg2[%c0_9, %c0_10] : memref<8x32xf32, #tpu.memory_space<vmem>>, vector<8x32xf32>
    %10 = tpu.concatenate %9, %8 in 0 : vector<8x32xf32>, vector<8x32xf32> -> vector<16x32xf32>
    %11 = arith.truncf %10 : vector<16x32xf32> to vector<16x32xbf16>
    %c0_11 = arith.constant 0 : index
    %c0_12 = arith.constant 0 : index
    %c0_13 = arith.constant 0 : index
    %12 = vector.load %arg5[%c0_11, %c0_12, %c0_13] : memref<2x32x32xbf16, #tpu.memory_space<vmem>>, vector<1x32x32xbf16>
    %13 = vector.shape_cast %12 : vector<1x32x32xbf16> to vector<32x32xbf16>
    %cst_14 = arith.constant dense<0.000000e+00> : vector<16x32xf32>
    %14 = tpu.matmul %11, %13, %cst_14 {dimension_numbers = #tpu.dot_dimension_numbers<[1], [0], [0], [1], [0, 0, 1, 1], [], []>} : vector<16x32xbf16>, vector<32x32xbf16>, vector<16x32xf32> -> vector<16x32xf32>
    %c0_15 = arith.constant 0 : index
    %c0_16 = arith.constant 0 : index
    %c0_17 = arith.constant 0 : index
    %15 = vector.load %arg6[%c0_15, %c0_16, %c0_17] : memref<2x1x32xf32, #tpu.memory_space<vmem>>, vector<1x1x32xf32>
    %16 = vector.shape_cast %15 : vector<1x1x32xf32> to vector<1x32xf32>
    %17 = vector.broadcast %16 : vector<1x32xf32> to vector<16x32xf32>
    %18 = arith.addf %14, %17 : vector<16x32xf32>
    %c0_18 = arith.constant 0 : index
    %c0_19 = arith.constant 0 : index
    %c0_20 = arith.constant 0 : index
    %19 = vector.load %arg7[%c0_18, %c0_19, %c0_20] : memref<2x32x32xbf16, #tpu.memory_space<vmem>>, vector<1x32x32xbf16>
    %20 = vector.shape_cast %19 : vector<1x32x32xbf16> to vector<32x32xbf16>
    %cst_21 = arith.constant dense<0.000000e+00> : vector<16x32xf32>
    %21 = tpu.matmul %11, %20, %cst_21 {dimension_numbers = #tpu.dot_dimension_numbers<[1], [0], [0], [1], [0, 0, 1, 1], [], []>} : vector<16x32xbf16>, vector<32x32xbf16>, vector<16x32xf32> -> vector<16x32xf32>
    %c0_22 = arith.constant 0 : index
    %c0_23 = arith.constant 0 : index
    %c0_24 = arith.constant 0 : index
    %22 = vector.load %arg8[%c0_22, %c0_23, %c0_24] : memref<2x1x32xf32, #tpu.memory_space<vmem>>, vector<1x1x32xf32>
    %23 = vector.shape_cast %22 : vector<1x1x32xf32> to vector<1x32xf32>
    %24 = vector.broadcast %23 : vector<1x32xf32> to vector<16x32xf32>
    %25 = arith.addf %21, %24 : vector<16x32xf32>
    %c0_25 = arith.constant 0 : index
    %c0_26 = arith.constant 0 : index
    %c0_27 = arith.constant 0 : index
    %26 = vector.load %arg9[%c0_25, %c0_26, %c0_27] : memref<2x32x32xbf16, #tpu.memory_space<vmem>>, vector<1x32x32xbf16>
    %27 = vector.shape_cast %26 : vector<1x32x32xbf16> to vector<32x32xbf16>
    %cst_28 = arith.constant dense<0.000000e+00> : vector<16x32xf32>
    %28 = tpu.matmul %11, %27, %cst_28 {dimension_numbers = #tpu.dot_dimension_numbers<[1], [0], [0], [1], [0, 0, 1, 1], [], []>} : vector<16x32xbf16>, vector<32x32xbf16>, vector<16x32xf32> -> vector<16x32xf32>
    %c0_29 = arith.constant 0 : index
    %c0_30 = arith.constant 0 : index
    %c0_31 = arith.constant 0 : index
    %29 = vector.load %arg10[%c0_29, %c0_30, %c0_31] : memref<2x1x32xf32, #tpu.memory_space<vmem>>, vector<1x1x32xf32>
    %30 = vector.shape_cast %29 : vector<1x1x32xf32> to vector<1x32xf32>
    %31 = vector.broadcast %30 : vector<1x32xf32> to vector<16x32xf32>
    %32 = arith.addf %28, %31 : vector<16x32xf32>
    %c8_i32 = arith.constant 8 : i32
    %33 = tpu.dynamic_rotate %25 by %c8_i32 dim 0 : vector<16x32xf32>, i32 -> vector<16x32xf32>
    %c8_i32_32 = arith.constant 8 : i32
    %34 = tpu.dynamic_rotate %32 by %c8_i32_32 dim 0 : vector<16x32xf32>, i32 -> vector<16x32xf32>
    %35 = arith.mulf %18, %25 : vector<16x32xf32>
    %36 = arith.mulf %18, %33 : vector<16x32xf32>
    %37 = tpu.concatenate %35, %36 in 0 : vector<16x32xf32>, vector<16x32xf32> -> vector<32x32xf32>
    %38 = arith.truncf %37 : vector<32x32xf32> to vector<32x32xbf16>
    %cst_33 = arith.constant dense<0.000000e+00> : vector<32x4xf32>
    %39 = tpu.matmul %38, %0, %cst_33 {dimension_numbers = #tpu.dot_dimension_numbers<[1], [0], [0], [1], [0, 0, 1, 1], [], []>} : vector<32x32xbf16>, vector<32x4xbf16>, vector<32x4xf32> -> vector<32x4xf32>
    %40 = vector.extract_strided_slice %39 {offsets = [0, 0], sizes = [16, 4], strides = [1, 1]} : vector<32x4xf32> to vector<16x4xf32>
    %41 = vector.extract_strided_slice %39 {offsets = [16, 0], sizes = [16, 4], strides = [1, 1]} : vector<32x4xf32> to vector<16x4xf32>
    %42 = arith.maximumf %40, %41 : vector<16x4xf32>
    %43 = arith.subf %40, %42 : vector<16x4xf32>
    %44 = math.exp %43 : vector<16x4xf32>
    %45 = arith.subf %41, %42 : vector<16x4xf32>
    %46 = math.exp %45 : vector<16x4xf32>
    %47 = arith.addf %44, %46 : vector<16x4xf32>
    %48 = tpu.reciprocal %47 {approx = true} : vector<16x4xf32> -> vector<16x4xf32>
    %49 = arith.mulf %47, %48 : vector<16x4xf32>
    %cst_34 = arith.constant 2.000000e+00 : f32
    %50 = vector.broadcast %cst_34 : f32 to vector<16x4xf32>
    %51 = arith.subf %50, %49 : vector<16x4xf32>
    %52 = arith.mulf %48, %51 : vector<16x4xf32>
    %53 = arith.mulf %44, %52 : vector<16x4xf32>
    %54 = arith.mulf %46, %52 : vector<16x4xf32>
    %55 = tpu.concatenate %53, %54 in 0 : vector<16x4xf32>, vector<16x4xf32> -> vector<32x4xf32>
    %56 = arith.truncf %55 : vector<32x4xf32> to vector<32x4xbf16>
    %cst_35 = arith.constant dense<0.000000e+00> : vector<32x32xf32>
    %57 = tpu.matmul %56, %1, %cst_35 {dimension_numbers = #tpu.dot_dimension_numbers<[1], [0], [0], [1], [0, 0, 1, 1], [], []>} : vector<32x4xbf16>, vector<4x32xbf16>, vector<32x32xf32> -> vector<32x32xf32>
    %58 = vector.extract_strided_slice %57 {offsets = [0, 0], sizes = [16, 32], strides = [1, 1]} : vector<32x32xf32> to vector<16x32xf32>
    %59 = arith.mulf %58, %32 : vector<16x32xf32>
    %60 = vector.extract_strided_slice %57 {offsets = [16, 0], sizes = [16, 32], strides = [1, 1]} : vector<32x32xf32> to vector<16x32xf32>
    %61 = arith.mulf %60, %34 : vector<16x32xf32>
    %62 = arith.addf %59, %61 : vector<16x32xf32>
    %63 = arith.truncf %62 : vector<16x32xf32> to vector<16x32xbf16>
    %c0_36 = arith.constant 0 : index
    %c0_37 = arith.constant 0 : index
    %c0_38 = arith.constant 0 : index
    %64 = vector.load %arg11[%c0_36, %c0_37, %c0_38] : memref<2x32x32xbf16, #tpu.memory_space<vmem>>, vector<1x32x32xbf16>
    %65 = vector.shape_cast %64 : vector<1x32x32xbf16> to vector<32x32xbf16>
    %cst_39 = arith.constant dense<0.000000e+00> : vector<16x32xf32>
    %66 = tpu.matmul %63, %65, %cst_39 {dimension_numbers = #tpu.dot_dimension_numbers<[1], [0], [0], [1], [0, 0, 1, 1], [], []>} : vector<16x32xbf16>, vector<32x32xbf16>, vector<16x32xf32> -> vector<16x32xf32>
    %c0_40 = arith.constant 0 : index
    %c0_41 = arith.constant 0 : index
    %c0_42 = arith.constant 0 : index
    %67 = vector.load %arg12[%c0_40, %c0_41, %c0_42] : memref<2x1x32xf32, #tpu.memory_space<vmem>>, vector<1x1x32xf32>
    %68 = vector.shape_cast %67 : vector<1x1x32xf32> to vector<1x32xf32>
    %69 = vector.broadcast %68 : vector<1x32xf32> to vector<16x32xf32>
    %70 = arith.addf %66, %69 : vector<16x32xf32>
    %71 = arith.addf %10, %70 : vector<16x32xf32>
    %c0_43 = arith.constant 0 : index
    %c0_44 = arith.constant 0 : index
    %c0_45 = arith.constant 0 : index
    %72 = vector.load %arg17[%c0_43, %c0_44, %c0_45] : memref<2x1x32xf32, #tpu.memory_space<vmem>>, vector<1x1x32xf32>
    %73 = vector.shape_cast %72 : vector<1x1x32xf32> to vector<1x32xf32>
    %c0_46 = arith.constant 0 : index
    %c0_47 = arith.constant 0 : index
    %c0_48 = arith.constant 0 : index
    %74 = vector.load %arg18[%c0_46, %c0_47, %c0_48] : memref<2x1x32xf32, #tpu.memory_space<vmem>>, vector<1x1x32xf32>
    %75 = vector.shape_cast %74 : vector<1x1x32xf32> to vector<1x32xf32>
    %cst_49 = arith.constant dense<0.000000e+00> : vector<16xf32>
    %76 = vector.multi_reduction <add>, %71, %cst_49 [1] : vector<16x32xf32> to vector<16xf32>
    %77 = vector.shape_cast %76 : vector<16xf32> to vector<16x1xf32>
    %cst_50 = arith.constant 3.200000e+01 : f32
    %78 = vector.broadcast %cst_50 : f32 to vector<16x1xf32>
    %79 = arith.divf %77, %78 : vector<16x1xf32>
    %80 = vector.broadcast %79 : vector<16x1xf32> to vector<16x32xf32>
    %81 = arith.subf %71, %80 : vector<16x32xf32>
    %82 = arith.mulf %81, %81 : vector<16x32xf32>
    %cst_51 = arith.constant dense<0.000000e+00> : vector<16xf32>
    %83 = vector.multi_reduction <add>, %82, %cst_51 [1] : vector<16x32xf32> to vector<16xf32>
    %84 = vector.shape_cast %83 : vector<16xf32> to vector<16x1xf32>
    %cst_52 = arith.constant 3.200000e+01 : f32
    %85 = vector.broadcast %cst_52 : f32 to vector<16x1xf32>
    %86 = arith.divf %84, %85 : vector<16x1xf32>
    %cst_53 = arith.constant 9.99999974E-6 : f32
    %87 = vector.broadcast %cst_53 : f32 to vector<16x1xf32>
    %88 = arith.addf %86, %87 : vector<16x1xf32>
    %89 = math.rsqrt %88 : vector<16x1xf32>
    %90 = vector.broadcast %89 : vector<16x1xf32> to vector<16x32xf32>
    %91 = arith.mulf %81, %90 : vector<16x32xf32>
    %92 = vector.broadcast %73 : vector<1x32xf32> to vector<16x32xf32>
    %93 = arith.mulf %91, %92 : vector<16x32xf32>
    %94 = vector.broadcast %75 : vector<1x32xf32> to vector<16x32xf32>
    %95 = arith.addf %93, %94 : vector<16x32xf32>
    %96 = arith.truncf %95 : vector<16x32xf32> to vector<16x32xbf16>
    %c0_54 = arith.constant 0 : index
    %c0_55 = arith.constant 0 : index
    %c0_56 = arith.constant 0 : index
    %97 = vector.load %arg13[%c0_54, %c0_55, %c0_56] : memref<2x32x128xbf16, #tpu.memory_space<vmem>>, vector<1x32x128xbf16>
    %98 = vector.shape_cast %97 : vector<1x32x128xbf16> to vector<32x128xbf16>
    %cst_57 = arith.constant dense<0.000000e+00> : vector<16x128xf32>
    %99 = tpu.matmul %96, %98, %cst_57 {dimension_numbers = #tpu.dot_dimension_numbers<[1], [0], [0], [1], [0, 0, 1, 1], [], []>} : vector<16x32xbf16>, vector<32x128xbf16>, vector<16x128xf32> -> vector<16x128xf32>
    %c0_58 = arith.constant 0 : index
    %c0_59 = arith.constant 0 : index
    %c0_60 = arith.constant 0 : index
    %100 = vector.load %arg14[%c0_58, %c0_59, %c0_60] : memref<2x1x128xf32, #tpu.memory_space<vmem>>, vector<1x1x128xf32>
    %101 = vector.shape_cast %100 : vector<1x1x128xf32> to vector<1x128xf32>
    %102 = vector.broadcast %101 : vector<1x128xf32> to vector<16x128xf32>
    %103 = arith.addf %99, %102 : vector<16x128xf32>
    %cst_61 = arith.constant 0.000000e+00 : f32
    %104 = vector.broadcast %cst_61 : f32 to vector<16x128xf32>
    %105 = arith.maximumf %103, %104 : vector<16x128xf32>
    %106 = arith.truncf %105 : vector<16x128xf32> to vector<16x128xbf16>
    %c0_62 = arith.constant 0 : index
    %c0_63 = arith.constant 0 : index
    %c0_64 = arith.constant 0 : index
    %107 = vector.load %arg15[%c0_62, %c0_63, %c0_64] : memref<2x128x32xbf16, #tpu.memory_space<vmem>>, vector<1x128x32xbf16>
    %108 = vector.shape_cast %107 : vector<1x128x32xbf16> to vector<128x32xbf16>
    %cst_65 = arith.constant dense<0.000000e+00> : vector<16x32xf32>
    %109 = tpu.matmul %106, %108, %cst_65 {dimension_numbers = #tpu.dot_dimension_numbers<[1], [0], [0], [1], [0, 0, 1, 1], [], []>} : vector<16x128xbf16>, vector<128x32xbf16>, vector<16x32xf32> -> vector<16x32xf32>
    %c0_66 = arith.constant 0 : index
    %c0_67 = arith.constant 0 : index
    %c0_68 = arith.constant 0 : index
    %110 = vector.load %arg16[%c0_66, %c0_67, %c0_68] : memref<2x1x32xf32, #tpu.memory_space<vmem>>, vector<1x1x32xf32>
    %111 = vector.shape_cast %110 : vector<1x1x32xf32> to vector<1x32xf32>
    %112 = vector.broadcast %111 : vector<1x32xf32> to vector<16x32xf32>
    %113 = arith.addf %109, %112 : vector<16x32xf32>
    %114 = arith.addf %95, %113 : vector<16x32xf32>
    %c0_69 = arith.constant 0 : index
    %c0_70 = arith.constant 0 : index
    %c0_71 = arith.constant 0 : index
    %115 = vector.load %arg19[%c0_69, %c0_70, %c0_71] : memref<2x1x32xf32, #tpu.memory_space<vmem>>, vector<1x1x32xf32>
    %116 = vector.shape_cast %115 : vector<1x1x32xf32> to vector<1x32xf32>
    %c0_72 = arith.constant 0 : index
    %c0_73 = arith.constant 0 : index
    %c0_74 = arith.constant 0 : index
    %117 = vector.load %arg20[%c0_72, %c0_73, %c0_74] : memref<2x1x32xf32, #tpu.memory_space<vmem>>, vector<1x1x32xf32>
    %118 = vector.shape_cast %117 : vector<1x1x32xf32> to vector<1x32xf32>
    %cst_75 = arith.constant dense<0.000000e+00> : vector<16xf32>
    %119 = vector.multi_reduction <add>, %114, %cst_75 [1] : vector<16x32xf32> to vector<16xf32>
    %120 = vector.shape_cast %119 : vector<16xf32> to vector<16x1xf32>
    %cst_76 = arith.constant 3.200000e+01 : f32
    %121 = vector.broadcast %cst_76 : f32 to vector<16x1xf32>
    %122 = arith.divf %120, %121 : vector<16x1xf32>
    %123 = vector.broadcast %122 : vector<16x1xf32> to vector<16x32xf32>
    %124 = arith.subf %114, %123 : vector<16x32xf32>
    %125 = arith.mulf %124, %124 : vector<16x32xf32>
    %cst_77 = arith.constant dense<0.000000e+00> : vector<16xf32>
    %126 = vector.multi_reduction <add>, %125, %cst_77 [1] : vector<16x32xf32> to vector<16xf32>
    %127 = vector.shape_cast %126 : vector<16xf32> to vector<16x1xf32>
    %cst_78 = arith.constant 3.200000e+01 : f32
    %128 = vector.broadcast %cst_78 : f32 to vector<16x1xf32>
    %129 = arith.divf %127, %128 : vector<16x1xf32>
    %cst_79 = arith.constant 9.99999974E-6 : f32
    %130 = vector.broadcast %cst_79 : f32 to vector<16x1xf32>
    %131 = arith.addf %129, %130 : vector<16x1xf32>
    %132 = math.rsqrt %131 : vector<16x1xf32>
    %133 = vector.broadcast %132 : vector<16x1xf32> to vector<16x32xf32>
    %134 = arith.mulf %124, %133 : vector<16x32xf32>
    %135 = vector.broadcast %116 : vector<1x32xf32> to vector<16x32xf32>
    %136 = arith.mulf %134, %135 : vector<16x32xf32>
    %137 = vector.broadcast %118 : vector<1x32xf32> to vector<16x32xf32>
    %138 = arith.addf %136, %137 : vector<16x32xf32>
    %139 = arith.truncf %138 : vector<16x32xf32> to vector<16x32xbf16>
    %c1 = arith.constant 1 : index
    %c0_80 = arith.constant 0 : index
    %c0_81 = arith.constant 0 : index
    %140 = vector.load %arg5[%c1, %c0_80, %c0_81] : memref<2x32x32xbf16, #tpu.memory_space<vmem>>, vector<1x32x32xbf16>
    %141 = vector.shape_cast %140 : vector<1x32x32xbf16> to vector<32x32xbf16>
    %cst_82 = arith.constant dense<0.000000e+00> : vector<16x32xf32>
    %142 = tpu.matmul %139, %141, %cst_82 {dimension_numbers = #tpu.dot_dimension_numbers<[1], [0], [0], [1], [0, 0, 1, 1], [], []>} : vector<16x32xbf16>, vector<32x32xbf16>, vector<16x32xf32> -> vector<16x32xf32>
    %c1_83 = arith.constant 1 : index
    %c0_84 = arith.constant 0 : index
    %c0_85 = arith.constant 0 : index
    %143 = vector.load %arg6[%c1_83, %c0_84, %c0_85] : memref<2x1x32xf32, #tpu.memory_space<vmem>>, vector<1x1x32xf32>
    %144 = vector.shape_cast %143 : vector<1x1x32xf32> to vector<1x32xf32>
    %145 = vector.broadcast %144 : vector<1x32xf32> to vector<16x32xf32>
    %146 = arith.addf %142, %145 : vector<16x32xf32>
    %c1_86 = arith.constant 1 : index
    %c0_87 = arith.constant 0 : index
    %c0_88 = arith.constant 0 : index
    %147 = vector.load %arg7[%c1_86, %c0_87, %c0_88] : memref<2x32x32xbf16, #tpu.memory_space<vmem>>, vector<1x32x32xbf16>
    %148 = vector.shape_cast %147 : vector<1x32x32xbf16> to vector<32x32xbf16>
    %cst_89 = arith.constant dense<0.000000e+00> : vector<16x32xf32>
    %149 = tpu.matmul %139, %148, %cst_89 {dimension_numbers = #tpu.dot_dimension_numbers<[1], [0], [0], [1], [0, 0, 1, 1], [], []>} : vector<16x32xbf16>, vector<32x32xbf16>, vector<16x32xf32> -> vector<16x32xf32>
    %c1_90 = arith.constant 1 : index
    %c0_91 = arith.constant 0 : index
    %c0_92 = arith.constant 0 : index
    %150 = vector.load %arg8[%c1_90, %c0_91, %c0_92] : memref<2x1x32xf32, #tpu.memory_space<vmem>>, vector<1x1x32xf32>
    %151 = vector.shape_cast %150 : vector<1x1x32xf32> to vector<1x32xf32>
    %152 = vector.broadcast %151 : vector<1x32xf32> to vector<16x32xf32>
    %153 = arith.addf %149, %152 : vector<16x32xf32>
    %c1_93 = arith.constant 1 : index
    %c0_94 = arith.constant 0 : index
    %c0_95 = arith.constant 0 : index
    %154 = vector.load %arg9[%c1_93, %c0_94, %c0_95] : memref<2x32x32xbf16, #tpu.memory_space<vmem>>, vector<1x32x32xbf16>
    %155 = vector.shape_cast %154 : vector<1x32x32xbf16> to vector<32x32xbf16>
    %cst_96 = arith.constant dense<0.000000e+00> : vector<16x32xf32>
    %156 = tpu.matmul %139, %155, %cst_96 {dimension_numbers = #tpu.dot_dimension_numbers<[1], [0], [0], [1], [0, 0, 1, 1], [], []>} : vector<16x32xbf16>, vector<32x32xbf16>, vector<16x32xf32> -> vector<16x32xf32>
    %c1_97 = arith.constant 1 : index
    %c0_98 = arith.constant 0 : index
    %c0_99 = arith.constant 0 : index
    %157 = vector.load %arg10[%c1_97, %c0_98, %c0_99] : memref<2x1x32xf32, #tpu.memory_space<vmem>>, vector<1x1x32xf32>
    %158 = vector.shape_cast %157 : vector<1x1x32xf32> to vector<1x32xf32>
    %159 = vector.broadcast %158 : vector<1x32xf32> to vector<16x32xf32>
    %160 = arith.addf %156, %159 : vector<16x32xf32>
    %c8_i32_100 = arith.constant 8 : i32
    %161 = tpu.dynamic_rotate %153 by %c8_i32_100 dim 0 : vector<16x32xf32>, i32 -> vector<16x32xf32>
    %c8_i32_101 = arith.constant 8 : i32
    %162 = tpu.dynamic_rotate %160 by %c8_i32_101 dim 0 : vector<16x32xf32>, i32 -> vector<16x32xf32>
    %163 = arith.mulf %146, %153 : vector<16x32xf32>
    %164 = arith.mulf %146, %161 : vector<16x32xf32>
    %165 = tpu.concatenate %163, %164 in 0 : vector<16x32xf32>, vector<16x32xf32> -> vector<32x32xf32>
    %166 = arith.truncf %165 : vector<32x32xf32> to vector<32x32xbf16>
    %cst_102 = arith.constant dense<0.000000e+00> : vector<32x4xf32>
    %167 = tpu.matmul %166, %0, %cst_102 {dimension_numbers = #tpu.dot_dimension_numbers<[1], [0], [0], [1], [0, 0, 1, 1], [], []>} : vector<32x32xbf16>, vector<32x4xbf16>, vector<32x4xf32> -> vector<32x4xf32>
    %168 = vector.extract_strided_slice %167 {offsets = [0, 0], sizes = [16, 4], strides = [1, 1]} : vector<32x4xf32> to vector<16x4xf32>
    %169 = vector.extract_strided_slice %167 {offsets = [16, 0], sizes = [16, 4], strides = [1, 1]} : vector<32x4xf32> to vector<16x4xf32>
    %170 = arith.maximumf %168, %169 : vector<16x4xf32>
    %171 = arith.subf %168, %170 : vector<16x4xf32>
    %172 = math.exp %171 : vector<16x4xf32>
    %173 = arith.subf %169, %170 : vector<16x4xf32>
    %174 = math.exp %173 : vector<16x4xf32>
    %175 = arith.addf %172, %174 : vector<16x4xf32>
    %176 = tpu.reciprocal %175 {approx = true} : vector<16x4xf32> -> vector<16x4xf32>
    %177 = arith.mulf %175, %176 : vector<16x4xf32>
    %cst_103 = arith.constant 2.000000e+00 : f32
    %178 = vector.broadcast %cst_103 : f32 to vector<16x4xf32>
    %179 = arith.subf %178, %177 : vector<16x4xf32>
    %180 = arith.mulf %176, %179 : vector<16x4xf32>
    %181 = arith.mulf %172, %180 : vector<16x4xf32>
    %182 = arith.mulf %174, %180 : vector<16x4xf32>
    %183 = tpu.concatenate %181, %182 in 0 : vector<16x4xf32>, vector<16x4xf32> -> vector<32x4xf32>
    %184 = arith.truncf %183 : vector<32x4xf32> to vector<32x4xbf16>
    %cst_104 = arith.constant dense<0.000000e+00> : vector<32x32xf32>
    %185 = tpu.matmul %184, %1, %cst_104 {dimension_numbers = #tpu.dot_dimension_numbers<[1], [0], [0], [1], [0, 0, 1, 1], [], []>} : vector<32x4xbf16>, vector<4x32xbf16>, vector<32x32xf32> -> vector<32x32xf32>
    %186 = vector.extract_strided_slice %185 {offsets = [0, 0], sizes = [16, 32], strides = [1, 1]} : vector<32x32xf32> to vector<16x32xf32>
    %187 = arith.mulf %186, %160 : vector<16x32xf32>
    %188 = vector.extract_strided_slice %185 {offsets = [16, 0], sizes = [16, 32], strides = [1, 1]} : vector<32x32xf32> to vector<16x32xf32>
    %189 = arith.mulf %188, %162 : vector<16x32xf32>
    %190 = arith.addf %187, %189 : vector<16x32xf32>
    %191 = arith.truncf %190 : vector<16x32xf32> to vector<16x32xbf16>
    %c1_105 = arith.constant 1 : index
    %c0_106 = arith.constant 0 : index
    %c0_107 = arith.constant 0 : index
    %192 = vector.load %arg11[%c1_105, %c0_106, %c0_107] : memref<2x32x32xbf16, #tpu.memory_space<vmem>>, vector<1x32x32xbf16>
    %193 = vector.shape_cast %192 : vector<1x32x32xbf16> to vector<32x32xbf16>
    %cst_108 = arith.constant dense<0.000000e+00> : vector<16x32xf32>
    %194 = tpu.matmul %191, %193, %cst_108 {dimension_numbers = #tpu.dot_dimension_numbers<[1], [0], [0], [1], [0, 0, 1, 1], [], []>} : vector<16x32xbf16>, vector<32x32xbf16>, vector<16x32xf32> -> vector<16x32xf32>
    %c1_109 = arith.constant 1 : index
    %c0_110 = arith.constant 0 : index
    %c0_111 = arith.constant 0 : index
    %195 = vector.load %arg12[%c1_109, %c0_110, %c0_111] : memref<2x1x32xf32, #tpu.memory_space<vmem>>, vector<1x1x32xf32>
    %196 = vector.shape_cast %195 : vector<1x1x32xf32> to vector<1x32xf32>
    %197 = vector.broadcast %196 : vector<1x32xf32> to vector<16x32xf32>
    %198 = arith.addf %194, %197 : vector<16x32xf32>
    %199 = arith.addf %138, %198 : vector<16x32xf32>
    %c1_112 = arith.constant 1 : index
    %c0_113 = arith.constant 0 : index
    %c0_114 = arith.constant 0 : index
    %200 = vector.load %arg17[%c1_112, %c0_113, %c0_114] : memref<2x1x32xf32, #tpu.memory_space<vmem>>, vector<1x1x32xf32>
    %201 = vector.shape_cast %200 : vector<1x1x32xf32> to vector<1x32xf32>
    %c1_115 = arith.constant 1 : index
    %c0_116 = arith.constant 0 : index
    %c0_117 = arith.constant 0 : index
    %202 = vector.load %arg18[%c1_115, %c0_116, %c0_117] : memref<2x1x32xf32, #tpu.memory_space<vmem>>, vector<1x1x32xf32>
    %203 = vector.shape_cast %202 : vector<1x1x32xf32> to vector<1x32xf32>
    %cst_118 = arith.constant dense<0.000000e+00> : vector<16xf32>
    %204 = vector.multi_reduction <add>, %199, %cst_118 [1] : vector<16x32xf32> to vector<16xf32>
    %205 = vector.shape_cast %204 : vector<16xf32> to vector<16x1xf32>
    %cst_119 = arith.constant 3.200000e+01 : f32
    %206 = vector.broadcast %cst_119 : f32 to vector<16x1xf32>
    %207 = arith.divf %205, %206 : vector<16x1xf32>
    %208 = vector.broadcast %207 : vector<16x1xf32> to vector<16x32xf32>
    %209 = arith.subf %199, %208 : vector<16x32xf32>
    %210 = arith.mulf %209, %209 : vector<16x32xf32>
    %cst_120 = arith.constant dense<0.000000e+00> : vector<16xf32>
    %211 = vector.multi_reduction <add>, %210, %cst_120 [1] : vector<16x32xf32> to vector<16xf32>
    %212 = vector.shape_cast %211 : vector<16xf32> to vector<16x1xf32>
    %cst_121 = arith.constant 3.200000e+01 : f32
    %213 = vector.broadcast %cst_121 : f32 to vector<16x1xf32>
    %214 = arith.divf %212, %213 : vector<16x1xf32>
    %cst_122 = arith.constant 9.99999974E-6 : f32
    %215 = vector.broadcast %cst_122 : f32 to vector<16x1xf32>
    %216 = arith.addf %214, %215 : vector<16x1xf32>
    %217 = math.rsqrt %216 : vector<16x1xf32>
    %218 = vector.broadcast %217 : vector<16x1xf32> to vector<16x32xf32>
    %219 = arith.mulf %209, %218 : vector<16x32xf32>
    %220 = vector.broadcast %201 : vector<1x32xf32> to vector<16x32xf32>
    %221 = arith.mulf %219, %220 : vector<16x32xf32>
    %222 = vector.broadcast %203 : vector<1x32xf32> to vector<16x32xf32>
    %223 = arith.addf %221, %222 : vector<16x32xf32>
    %224 = arith.truncf %223 : vector<16x32xf32> to vector<16x32xbf16>
    %c1_123 = arith.constant 1 : index
    %c0_124 = arith.constant 0 : index
    %c0_125 = arith.constant 0 : index
    %225 = vector.load %arg13[%c1_123, %c0_124, %c0_125] : memref<2x32x128xbf16, #tpu.memory_space<vmem>>, vector<1x32x128xbf16>
    %226 = vector.shape_cast %225 : vector<1x32x128xbf16> to vector<32x128xbf16>
    %cst_126 = arith.constant dense<0.000000e+00> : vector<16x128xf32>
    %227 = tpu.matmul %224, %226, %cst_126 {dimension_numbers = #tpu.dot_dimension_numbers<[1], [0], [0], [1], [0, 0, 1, 1], [], []>} : vector<16x32xbf16>, vector<32x128xbf16>, vector<16x128xf32> -> vector<16x128xf32>
    %c1_127 = arith.constant 1 : index
    %c0_128 = arith.constant 0 : index
    %c0_129 = arith.constant 0 : index
    %228 = vector.load %arg14[%c1_127, %c0_128, %c0_129] : memref<2x1x128xf32, #tpu.memory_space<vmem>>, vector<1x1x128xf32>
    %229 = vector.shape_cast %228 : vector<1x1x128xf32> to vector<1x128xf32>
    %230 = vector.broadcast %229 : vector<1x128xf32> to vector<16x128xf32>
    %231 = arith.addf %227, %230 : vector<16x128xf32>
    %cst_130 = arith.constant 0.000000e+00 : f32
    %232 = vector.broadcast %cst_130 : f32 to vector<16x128xf32>
    %233 = arith.maximumf %231, %232 : vector<16x128xf32>
    %234 = arith.truncf %233 : vector<16x128xf32> to vector<16x128xbf16>
    %c1_131 = arith.constant 1 : index
    %c0_132 = arith.constant 0 : index
    %c0_133 = arith.constant 0 : index
    %235 = vector.load %arg15[%c1_131, %c0_132, %c0_133] : memref<2x128x32xbf16, #tpu.memory_space<vmem>>, vector<1x128x32xbf16>
    %236 = vector.shape_cast %235 : vector<1x128x32xbf16> to vector<128x32xbf16>
    %cst_134 = arith.constant dense<0.000000e+00> : vector<16x32xf32>
    %237 = tpu.matmul %234, %236, %cst_134 {dimension_numbers = #tpu.dot_dimension_numbers<[1], [0], [0], [1], [0, 0, 1, 1], [], []>} : vector<16x128xbf16>, vector<128x32xbf16>, vector<16x32xf32> -> vector<16x32xf32>
    %c1_135 = arith.constant 1 : index
    %c0_136 = arith.constant 0 : index
    %c0_137 = arith.constant 0 : index
    %238 = vector.load %arg16[%c1_135, %c0_136, %c0_137] : memref<2x1x32xf32, #tpu.memory_space<vmem>>, vector<1x1x32xf32>
    %239 = vector.shape_cast %238 : vector<1x1x32xf32> to vector<1x32xf32>
    %240 = vector.broadcast %239 : vector<1x32xf32> to vector<16x32xf32>
    %241 = arith.addf %237, %240 : vector<16x32xf32>
    %242 = arith.addf %223, %241 : vector<16x32xf32>
    %c1_138 = arith.constant 1 : index
    %c0_139 = arith.constant 0 : index
    %c0_140 = arith.constant 0 : index
    %243 = vector.load %arg19[%c1_138, %c0_139, %c0_140] : memref<2x1x32xf32, #tpu.memory_space<vmem>>, vector<1x1x32xf32>
    %244 = vector.shape_cast %243 : vector<1x1x32xf32> to vector<1x32xf32>
    %c1_141 = arith.constant 1 : index
    %c0_142 = arith.constant 0 : index
    %c0_143 = arith.constant 0 : index
    %245 = vector.load %arg20[%c1_141, %c0_142, %c0_143] : memref<2x1x32xf32, #tpu.memory_space<vmem>>, vector<1x1x32xf32>
    %246 = vector.shape_cast %245 : vector<1x1x32xf32> to vector<1x32xf32>
    %cst_144 = arith.constant dense<0.000000e+00> : vector<16xf32>
    %247 = vector.multi_reduction <add>, %242, %cst_144 [1] : vector<16x32xf32> to vector<16xf32>
    %248 = vector.shape_cast %247 : vector<16xf32> to vector<16x1xf32>
    %cst_145 = arith.constant 3.200000e+01 : f32
    %249 = vector.broadcast %cst_145 : f32 to vector<16x1xf32>
    %250 = arith.divf %248, %249 : vector<16x1xf32>
    %251 = vector.broadcast %250 : vector<16x1xf32> to vector<16x32xf32>
    %252 = arith.subf %242, %251 : vector<16x32xf32>
    %253 = arith.mulf %252, %252 : vector<16x32xf32>
    %cst_146 = arith.constant dense<0.000000e+00> : vector<16xf32>
    %254 = vector.multi_reduction <add>, %253, %cst_146 [1] : vector<16x32xf32> to vector<16xf32>
    %255 = vector.shape_cast %254 : vector<16xf32> to vector<16x1xf32>
    %cst_147 = arith.constant 3.200000e+01 : f32
    %256 = vector.broadcast %cst_147 : f32 to vector<16x1xf32>
    %257 = arith.divf %255, %256 : vector<16x1xf32>
    %cst_148 = arith.constant 9.99999974E-6 : f32
    %258 = vector.broadcast %cst_148 : f32 to vector<16x1xf32>
    %259 = arith.addf %257, %258 : vector<16x1xf32>
    %260 = math.rsqrt %259 : vector<16x1xf32>
    %261 = vector.broadcast %260 : vector<16x1xf32> to vector<16x32xf32>
    %262 = arith.mulf %252, %261 : vector<16x32xf32>
    %263 = vector.broadcast %244 : vector<1x32xf32> to vector<16x32xf32>
    %264 = arith.mulf %262, %263 : vector<16x32xf32>
    %265 = vector.broadcast %246 : vector<1x32xf32> to vector<16x32xf32>
    %266 = arith.addf %264, %265 : vector<16x32xf32>
    %267 = vector.extract_strided_slice %266 {offsets = [8, 0], sizes = [8, 32], strides = [1, 1]} : vector<16x32xf32> to vector<8x32xf32>
    %268 = arith.truncf %267 : vector<8x32xf32> to vector<8x32xbf16>
    %c0_149 = arith.constant 0 : index
    %c0_150 = arith.constant 0 : index
    %269 = vector.load %arg21[%c0_149, %c0_150] : memref<32x4xbf16, #tpu.memory_space<vmem>>, vector<32x4xbf16>
    %cst_151 = arith.constant dense<0.000000e+00> : vector<8x4xf32>
    %270 = tpu.matmul %268, %269, %cst_151 {dimension_numbers = #tpu.dot_dimension_numbers<[1], [0], [0], [1], [0, 0, 1, 1], [], []>} : vector<8x32xbf16>, vector<32x4xbf16>, vector<8x4xf32> -> vector<8x4xf32>
    %c0_152 = arith.constant 0 : index
    %c0_153 = arith.constant 0 : index
    %271 = vector.load %arg22[%c0_152, %c0_153] : memref<1x4xf32, #tpu.memory_space<vmem>>, vector<1x4xf32>
    %272 = vector.broadcast %271 : vector<1x4xf32> to vector<8x4xf32>
    %273 = arith.addf %270, %272 : vector<8x4xf32>
    %cst_154 = arith.constant dense<0xFF800000> : vector<8xf32>
    %274 = vector.multi_reduction <maximumf>, %273, %cst_154 [1] : vector<8x4xf32> to vector<8xf32>
    %275 = vector.shape_cast %274 : vector<8xf32> to vector<8x1xf32>
    %276 = vector.broadcast %275 : vector<8x1xf32> to vector<8x4xf32>
    %277 = arith.subf %273, %276 : vector<8x4xf32>
    %278 = math.exp %277 : vector<8x4xf32>
    %cst_155 = arith.constant dense<0.000000e+00> : vector<8xf32>
    %279 = vector.multi_reduction <add>, %278, %cst_155 [1] : vector<8x4xf32> to vector<8xf32>
    %280 = vector.shape_cast %279 : vector<8xf32> to vector<8x1xf32>
    %281 = tpu.reciprocal %280 {approx = true} : vector<8x1xf32> -> vector<8x1xf32>
    %282 = arith.mulf %280, %281 : vector<8x1xf32>
    %cst_156 = arith.constant 2.000000e+00 : f32
    %283 = vector.broadcast %cst_156 : f32 to vector<8x1xf32>
    %284 = arith.subf %283, %282 : vector<8x1xf32>
    %285 = arith.mulf %281, %284 : vector<8x1xf32>
    %286 = vector.broadcast %285 : vector<8x1xf32> to vector<8x4xf32>
    %287 = arith.mulf %278, %286 : vector<8x4xf32>
    %cst_157 = arith.constant 0.000000e+00 : f32
    %288 = vector.broadcast %cst_157 : f32 to vector<8x92xf32>
    %289 = tpu.concatenate %267, %287, %288 in 1 : vector<8x32xf32>, vector<8x4xf32>, vector<8x92xf32> -> vector<8x128xf32>
    %c0_158 = arith.constant 0 : index
    %c0_159 = arith.constant 0 : index
    %290 = vector.load %arg25[%c0_158, %c0_159] : memref<8x128xf32, #tpu.memory_space<vmem>>, vector<8x128xf32>
    tpu.vector_store %arg25[%c0_158, %c0_159], %289 {strides = array<i32>} : memref<8x128xf32, #tpu.memory_space<vmem>>, vector<8x128xf32>,
    return
  }
  func.func @transform_0(%arg0: i32) -> (i32, i32) {
    %c0_i32 = arith.constant 0 : i32
    %c0_i32_0 = arith.constant 0 : i32
    return %arg0, %c0_i32 : i32, i32
  }
  func.func @transform_1(%arg0: i32) -> (i32, i32) {
    %c0_i32 = arith.constant 0 : i32
    %c0_i32_0 = arith.constant 0 : i32
    return %arg0, %c0_i32 : i32, i32
  }
  func.func @transform_2(%arg0: i32) -> (i32, i32) {
    %c0_i32 = arith.constant 0 : i32
    %c0_i32_0 = arith.constant 0 : i32
    %c0_i32_1 = arith.constant 0 : i32
    return %c0_i32, %c0_i32_0 : i32, i32
  }
  func.func @transform_3(%arg0: i32) -> (i32, i32) {
    %c0_i32 = arith.constant 0 : i32
    %c0_i32_0 = arith.constant 0 : i32
    %c0_i32_1 = arith.constant 0 : i32
    return %c0_i32, %c0_i32_0 : i32, i32
  }
  func.func @transform_4(%arg0: i32) -> (i32, i32, i32) {
    %c0_i32 = arith.constant 0 : i32
    %c0_i32_0 = arith.constant 0 : i32
    %c0_i32_1 = arith.constant 0 : i32
    %c0_i32_2 = arith.constant 0 : i32
    return %c0_i32, %c0_i32_0, %c0_i32_1 : i32, i32, i32
  }
  func.func @transform_5(%arg0: i32) -> (i32, i32, i32) {
    %c0_i32 = arith.constant 0 : i32
    %c0_i32_0 = arith.constant 0 : i32
    %c0_i32_1 = arith.constant 0 : i32
    %c0_i32_2 = arith.constant 0 : i32
    return %c0_i32, %c0_i32_0, %c0_i32_1 : i32, i32, i32
  }
  func.func @transform_6(%arg0: i32) -> (i32, i32, i32) {
    %c0_i32 = arith.constant 0 : i32
    %c0_i32_0 = arith.constant 0 : i32
    %c0_i32_1 = arith.constant 0 : i32
    %c0_i32_2 = arith.constant 0 : i32
    return %c0_i32, %c0_i32_0, %c0_i32_1 : i32, i32, i32
  }
  func.func @transform_7(%arg0: i32) -> (i32, i32, i32) {
    %c0_i32 = arith.constant 0 : i32
    %c0_i32_0 = arith.constant 0 : i32
    %c0_i32_1 = arith.constant 0 : i32
    %c0_i32_2 = arith.constant 0 : i32
    return %c0_i32, %c0_i32_0, %c0_i32_1 : i32, i32, i32
  }
  func.func @transform_8(%arg0: i32) -> (i32, i32, i32) {
    %c0_i32 = arith.constant 0 : i32
    %c0_i32_0 = arith.constant 0 : i32
    %c0_i32_1 = arith.constant 0 : i32
    %c0_i32_2 = arith.constant 0 : i32
    return %c0_i32, %c0_i32_0, %c0_i32_1 : i32, i32, i32
  }
  func.func @transform_9(%arg0: i32) -> (i32, i32, i32) {
    %c0_i32 = arith.constant 0 : i32
    %c0_i32_0 = arith.constant 0 : i32
    %c0_i32_1 = arith.constant 0 : i32
    %c0_i32_2 = arith.constant 0 : i32
    return %c0_i32, %c0_i32_0, %c0_i32_1 : i32, i32, i32
  }
  func.func @transform_10(%arg0: i32) -> (i32, i32, i32) {
    %c0_i32 = arith.constant 0 : i32
    %c0_i32_0 = arith.constant 0 : i32
    %c0_i32_1 = arith.constant 0 : i32
    %c0_i32_2 = arith.constant 0 : i32
    return %c0_i32, %c0_i32_0, %c0_i32_1 : i32, i32, i32
  }
  func.func @transform_11(%arg0: i32) -> (i32, i32, i32) {
    %c0_i32 = arith.constant 0 : i32
    %c0_i32_0 = arith.constant 0 : i32
    %c0_i32_1 = arith.constant 0 : i32
    %c0_i32_2 = arith.constant 0 : i32
    return %c0_i32, %c0_i32_0, %c0_i32_1 : i32, i32, i32
  }
  func.func @transform_12(%arg0: i32) -> (i32, i32, i32) {
    %c0_i32 = arith.constant 0 : i32
    %c0_i32_0 = arith.constant 0 : i32
    %c0_i32_1 = arith.constant 0 : i32
    %c0_i32_2 = arith.constant 0 : i32
    return %c0_i32, %c0_i32_0, %c0_i32_1 : i32, i32, i32
  }
  func.func @transform_13(%arg0: i32) -> (i32, i32, i32) {
    %c0_i32 = arith.constant 0 : i32
    %c0_i32_0 = arith.constant 0 : i32
    %c0_i32_1 = arith.constant 0 : i32
    %c0_i32_2 = arith.constant 0 : i32
    return %c0_i32, %c0_i32_0, %c0_i32_1 : i32, i32, i32
  }
  func.func @transform_14(%arg0: i32) -> (i32, i32, i32) {
    %c0_i32 = arith.constant 0 : i32
    %c0_i32_0 = arith.constant 0 : i32
    %c0_i32_1 = arith.constant 0 : i32
    %c0_i32_2 = arith.constant 0 : i32
    return %c0_i32, %c0_i32_0, %c0_i32_1 : i32, i32, i32
  }
  func.func @transform_15(%arg0: i32) -> (i32, i32, i32) {
    %c0_i32 = arith.constant 0 : i32
    %c0_i32_0 = arith.constant 0 : i32
    %c0_i32_1 = arith.constant 0 : i32
    %c0_i32_2 = arith.constant 0 : i32
    return %c0_i32, %c0_i32_0, %c0_i32_1 : i32, i32, i32
  }
  func.func @transform_16(%arg0: i32) -> (i32, i32, i32) {
    %c0_i32 = arith.constant 0 : i32
    %c0_i32_0 = arith.constant 0 : i32
    %c0_i32_1 = arith.constant 0 : i32
    %c0_i32_2 = arith.constant 0 : i32
    return %c0_i32, %c0_i32_0, %c0_i32_1 : i32, i32, i32
  }
  func.func @transform_17(%arg0: i32) -> (i32, i32, i32) {
    %c0_i32 = arith.constant 0 : i32
    %c0_i32_0 = arith.constant 0 : i32
    %c0_i32_1 = arith.constant 0 : i32
    %c0_i32_2 = arith.constant 0 : i32
    return %c0_i32, %c0_i32_0, %c0_i32_1 : i32, i32, i32
  }
  func.func @transform_18(%arg0: i32) -> (i32, i32, i32) {
    %c0_i32 = arith.constant 0 : i32
    %c0_i32_0 = arith.constant 0 : i32
    %c0_i32_1 = arith.constant 0 : i32
    %c0_i32_2 = arith.constant 0 : i32
    return %c0_i32, %c0_i32_0, %c0_i32_1 : i32, i32, i32
  }
  func.func @transform_19(%arg0: i32) -> (i32, i32, i32) {
    %c0_i32 = arith.constant 0 : i32
    %c0_i32_0 = arith.constant 0 : i32
    %c0_i32_1 = arith.constant 0 : i32
    %c0_i32_2 = arith.constant 0 : i32
    return %c0_i32, %c0_i32_0, %c0_i32_1 : i32, i32, i32
  }
  func.func @transform_20(%arg0: i32) -> (i32, i32) {
    %c0_i32 = arith.constant 0 : i32
    %c0_i32_0 = arith.constant 0 : i32
    %c0_i32_1 = arith.constant 0 : i32
    return %c0_i32, %c0_i32_0 : i32, i32
  }
  func.func @transform_21(%arg0: i32) -> (i32, i32) {
    %c0_i32 = arith.constant 0 : i32
    %c0_i32_0 = arith.constant 0 : i32
    %c0_i32_1 = arith.constant 0 : i32
    return %c0_i32, %c0_i32_0 : i32, i32
  }
  func.func @transform_22(%arg0: i32) -> (i32, i32) {
    %c0_i32 = arith.constant 0 : i32
    %c0_i32_0 = arith.constant 0 : i32
    %c0_i32_1 = arith.constant 0 : i32
    return %c0_i32, %c0_i32_0 : i32, i32
  }
  func.func @transform_23(%arg0: i32) -> (i32, i32) {
    %c0_i32 = arith.constant 0 : i32
    %c0_i32_0 = arith.constant 0 : i32
    %c0_i32_1 = arith.constant 0 : i32
    return %c0_i32, %c0_i32_0 : i32, i32
  }
  func.func @transform_24(%arg0: i32) -> (i32, i32) {
    %c0_i32 = arith.constant 0 : i32
    %c0_i32_0 = arith.constant 0 : i32
    return %arg0, %c0_i32 : i32, i32
  }
}

</mosaic_0001>

<bundles_post_ra>
// kernel: tpu_custom_call.1
= control target key start
LH: loop header
LB: loop body
LE: loop exit
PB: predicated region body
PF: predicated region fallthrough
CT: control target
= control target key end

     0   :  { %s3595_s0 = inlined_call_operand.vmem [shape: f32[16,4], index: 0, kind: input, shape index: {}]   ;;  %s3596_s1 = inlined_call_operand.vmem [shape: f32[16,32], index: 1, kind: input, shape index: {}]   ;;  %s3597_s2 = inlined_call_operand.vmem [shape: bf16[4,32], index: 2, kind: input, shape index: {}]   ;;  %s3598_s3 = inlined_call_operand.hbm [shape: f32[1,32], index: 3, kind: input, shape index: {}]   ;;  %s3599_s4 = inlined_call_operand.vmem [shape: bf16[2,32,32], index: 4, kind: input, shape index: {}]   ;;  %s3600_s5 = inlined_call_operand.vmem [shape: f32[2,1,32], index: 5, kind: input, shape index: {}]   ;;  %s3601_s6 = inlined_call_operand.vmem [shape: bf16[2,32,32], index: 6, kind: input, shape index: {}]   ;;  %s3602_s7 = inlined_call_operand.vmem [shape: f32[2,1,32], index: 7, kind: input, shape index: {}]   ;;  %s3603_s8 = inlined_call_operand.vmem [shape: bf16[2,32,32], index: 8, kind: input, shape index: {}]   ;;  %s3604_s9 = inlined_call_operand.vmem [shape: f32[2,1,32], index: 9, kind: input, shape index: {}]   ;;  %s3605_s10 = inlined_call_operand.vmem [shape: bf16[2,32,32], index: 10, kind: input, shape index: {}]   ;;  %s3606_s11 = inlined_call_operand.vmem [shape: f32[2,1,32], index: 11, kind: input, shape index: {}]   ;;  %s3607_s12 = inlined_call_operand.vmem [shape: bf16[2,32,128], index: 12, kind: input, shape index: {}]   ;;  %s3608_s13 = inlined_call_operand.vmem [shape: f32[2,1,128], index: 13, kind: input, shape index: {}]   ;;  %s3609_s14 = inlined_call_operand.vmem [shape: bf16[2,128,32], index: 14, kind: input, shape index: {}]   ;;  %s3610_s15 = inlined_call_operand.vmem [shape: f32[2,1,32], index: 15, kind: input, shape index: {}]   ;;  %s3611_s16 = inlined_call_operand.vmem [shape: f32[2,1,32], index: 16, kind: input, shape index: {}]   ;;  %s3612_s17 = inlined_call_operand.vmem [shape: f32[2,1,32], index: 17, kind: input, shape index: {}]   ;;  %s3613_s18 = inlined_call_operand.vmem [shape: f32[2,1,32], index: 18, kind: input, shape index: {}]   ;;  %s3614_s19 = inlined_call_operand.vmem [shape: f32[2,1,32], index: 19, kind: input, shape index: {}]   ;;  %s3615_s20 = inlined_call_operand.vmem [shape: bf16[32,4], index: 20, kind: input, shape index: {}]   ;;  %s3616_s21 = inlined_call_operand.vmem [shape: f32[1,4], index: 21, kind: input, shape index: {}]   ;;  %s3617_s22 = inlined_call_operand.vmem [shape: bf16[32,4], index: 22, kind: input, shape index: {}]   ;;  %s3618_s23 = inlined_call_operand.vmem [shape: bf16[4,32], index: 23, kind: input, shape index: {}]   ;;  %s3619_s24 = inlined_call_operand.hbm [shape: f32[16,128], index: 24, kind: output, shape index: {}]  }
   0x1   :  { %3639 = sst [smem:[#allocation16_spill]] %s3595_s0 }
   0x2   :  { %3640 = sst [smem:[#allocation17_spill]] %s3596_s1 }
   0x3   :  { %3641 = sst [smem:[#allocation18_spill]] %s3597_s2 }
   0x4   :  { %3642 = sst [smem:[#allocation19_spill]] %s3598_s3 }
   0x5   :  { %3643 = sst [smem:[#allocation20_spill]] %s3599_s4 }
   0x6   :  { %3644 = sst [smem:[#allocation21_spill]] %s3600_s5 }
   0x7   :  { %3645 = sst [smem:[#allocation22_spill]] %s3601_s6 }
   0x8   :  { %3646 = sst [smem:[#allocation23_spill]] %s3602_s7 }
   0x9   :  { %3647 = sst [smem:[#allocation24_spill]] %s3603_s8 }
   0xa   :  { %3648 = sst [smem:[#allocation25_spill]] %s3604_s9 }
   0xb   :  { %3649 = sst [smem:[#allocation26_spill]] %s3619_s24 }
   0xc   :  { %29 = vsyncpa [#allocation3], 0 }
   0xd   :  { %30 = vsyncpa [#allocation4], 0 }
   0xe   :  { %32 = vsyncpa [#allocation4 + $0x1], 0  ;;  %s3141_s5 = smov 0   ;;  %s3143_s26 = smov 0  }
   0xf   :  { %s3145_s27 = smov 0   ;;  %s3147_s28 = smov 0  }
  0x10 LB: > { %3650 = sst [smem:[#allocation8_spill]] %s2997_s5  ;;  %s3162_s6 = sadd.s32 4294967295, %s3009_s28   ;;  %s3009_s28 = sphi %s3147_s28, %s3678_s28   ;;  %s3005_s27 = sphi %s3145_s27, %s3680_s27   ;;  %s3001_s26 = sphi %s3143_s26, %s3682_s26   ;;  %s2997_s5 = sphi %s3141_s5, %s3681_s5  }
  0x11   : > { %3651 = sst [smem:[#allocation9_spill]] %s3005_s27  ;;  %s2412_s2 = sadd.s32 4294967294, %s3009_s28  }
  0x12   : > { %3652 = sst [smem:[#allocation10_spill]] %s3009_s28  ;;  %s3166_s29 = sadd.s32 1, %s3009_s28  }
  0x13   : > { %3653 = sst [smem:[#allocation11_spill]] %s3162_s6  ;;  %s559_s0 = sadd.s32 1, %s3005_s27 }
  0x14   : > { %3654 = sst [smem:[#allocation12_spill]] %s3166_s29  ;;  %s556_s7 = ssub.s32 %s3009_s28, %s3166_s29 }
  0x15   : > { %p569_p0 = scmp.ne.s32.totalorder %s3005_s27, %s3001_s26  ;;  %p557_p1 = scmp.eq.s32.totalorder %s556_s7, 0 }
  0x16   : > { %p570_p2 = scmp.eq.s32.totalorder %s3162_s6, 1  ;;  %p575_p3 = scmp.ne.s32.totalorder %s3001_s26, %s2997_s5 }
  0x17   : > { %p576_p4 = scmp.eq.s32.totalorder %s2412_s2, 1  ;;  %p2413_p7 = scmp.ge.s32.totalorder %s3009_s28, 1 }
  0x18   : > { %s3177_s30 = scalar_select %p557_p1, %s3005_s27, %s559_s0  }
  0x19   : > { %p3179_p5 = por %p570_p2, %p569_p0  ;;  %p3183_p6 = por %p576_p4, %p575_p3 }
  0x1a   : > { %3655 = sst [smem:[#allocation13_spill]] %s3177_s30  ;;  %p583_p8 = scmp.lt.s32.totalorder %s3009_s28, 3 }
  0x1b   : > { %s3656_s3 = scalar_select %p3179_p5, 1, 0 }
  0x1c   : > { %s3658_s25 = scalar_select %p3183_p6, 1, 0 }
  0x1d   : > { %3657 = sst [smem:[#allocation14_spill]] %s3656_s3  ;;  %p2798_p9 = scmp.eq.s32.totalorder %s3162_s6, 0 }
  0x1e   : > { %3659 = sst [smem:[#allocation15_spill]] %s3658_s25  ;;  %p3190_p10 = pnand %p2413_p7, %p583_p8 }
  0x1f   : > { %s3011_s4 = smov [#allocation2]  }
  0x20   : > { %s599_s1 = sshll.u32 %s3011_s4, 4  ;;  %p2790_p11 = pneg %p3190_p10  ;;  %s600_s1 = int_to_ptr.vmem [resolvable:$true] %s599_s1 }
  0x21   : > { %s2930_s2 = scalar_lea.vmem %s600_s1, 16  ;;  %s2937_s0 = scalar_lea.vmem %s600_s1, 32 }
  0x22   : > { %p2791_p12 = pnand %p2798_p9, %p2790_p11  ;;  %p2931_p0 = scmp.ne.s32.totalorder %s600_s1, %s2930_s2 }
  0x23   : > { %p2938_p3 = scmp.lt.s32.totalorder %s600_s1, %s600_s1  ;;  %p2939_p4 = scmp.lt.s32.totalorder %s2937_s0, %s2930_s2 }
  0x24   : > { %p2921_p13 = pneg %p2791_p12 }
  0x25   : > { %p2940_p7 = por %p2939_p4, %p2938_p3 }
  0x26   : > { %p2933_p1 = pnand %p2931_p0, %p2921_p13 }
  0x28   : > { %p2934_p2 = pneg %p2933_p1 }
  0x2a   : > { %p2941_p8 = pnand %p2940_p7, %p2934_p2 }
  0x2c   : > { %2944 = shalt.err (!%p2941_p8)
}
  0x2d   : > { %s3661_s27 = sld [smem:[#allocation19_spill]] }
  0x2f   : > { %686 = sbr.rel (%p3190_p10) target bundleno = 4685 (0x124d), region = 116 }
  0x33   : > { %2793 = dma.hbm_to_vmem [thread:$0]  (!%p2791_p12), %s3661_s27, 16, %s600_s1, [#allocation3]  }
  0x34   : > { %2988 = dma.done.wait (%p2798_p9), [#allocation3], 16  }
  0x35   : > { %2990 = vsyncadd (%p2798_p9), [#allocation3], 4294967280  ;;  %p755_p11 = scmp.lt.s32.totalorder %s3162_s6, 1  ;;  %v3012_v0 = vmov 0.0   ;;  %vm3013_vm0 = vmmov 0   ;;  %vm783_vm1 = vcmask 1041408  }
  0x36   : > { %2620 = vmatprep.subr.bf16.mxu0 %v3012_v0  ;;  %2622 = vmatprep.mubr.msk.bf16.mxu0 %vm3013_vm0, %v3012_v0  ;;  %s3662_s1 = sld [smem:[#allocation16_spill]]  ;;  %vm779_vm2 = vcmask 31744   ;;  %v2421_v9 = vld [vmem:[#allocation2] ss:$0 sm:$0xff]  ;;  %vm852_vm3 = vcmask 261120   ;;  %v3265_v19 = vld [vmem:[%s3617_s22 + $0x8] sm:$0xff]  }
  0x37   : > { %s756_s27 = scalar_select %p755_p11, %s3162_s6, 1  ;;  %2642 = vmatprep.subr.bf16.mxu1 %v3012_v0  ;;  %2646 = vmatprep.mubr.msk.bf16.mxu1 %vm3013_vm0, %v3012_v0  ;;  %v3272_v20 = vld [vmem:[%s3617_s22] sm:$0xff]   ;;  %vm2312_vm4 = vcmask 293888  }
  0x38   : > { %s3663_s29 = sld [smem:[#allocation18_spill]]  ;;  %v3294_v45 = vld [vmem:[%s3618_s23] sm:$0x3]  ;;  %s3014_s3 = smov 32  }
  0x39   : > { %s2419_s30 = sshll.u32 %s756_s27, 3  ;;  %s3664_s28 = sld [smem:[#allocation20_spill]]  ;;  %v3300_v46 = vsel %vm783_vm1, %v3294_v45, 0 }
  0x3a   : > { %s3666_s6 = sld [smem:[#allocation24_spill]]  ;;  %s752_s8 = sand.u32 1, %s3001_s26  }
  0x3b   : > { %s3667_s4 = sld [smem:[#allocation17_spill]] }
  0x3c   : > { %s758_s2 = scalar_lea.vmem %s3662_s1, %s2419_s30  ;;  %s3668_s7 = sld [smem:[#allocation22_spill]] }
  0x3d   : > { %v769_v2 = vld [vmem:[%s758_s2] sm:$0xff]  ;;  %s3670_s0 = sld [smem:[#allocation21_spill]] }
  0x3e   : > { %v771_v1 = vld [vmem:[%s3663_s29] sm:$0x3]  ;;  %v770_v4 = vpack.c.bf16 %v769_v2, %v769_v2  ;;  %s3671_s9 = sld [smem:[#allocation25_spill]] }
  0x3f   : > { %v785_v3 = vsel %vm783_vm1, %v771_v1, 0  ;;  %s3665_s24 = smov %s3664_s28  ;;  %v2837_v5 = vld [vmem:[%s3664_s28 + $0x8] sm:$0xff]   ;;  %s3672_s28 = sld [smem:[#allocation11_spill]] }
  0x40   : > { %2621 = vmatpush3.bf16.msra.mxu0 %v785_v3  ;;  %v2838_v6 = vld [vmem:[%s3666_s6 + $0x8] sm:$0xff]   ;;  %v2839_v7 = vld [vmem:[%s3665_s24] sm:$0xff]  }
  0x41   : > { %2626 = vmatprep.subr.bf16.mxu0 %v3012_v0  ;;  %2643 = vmatpush3.bf16.msra.mxu1 %v2838_v6  ;;  %v2840_v8 = vld [vmem:[%s3666_s6] sm:$0xff]   ;;  %s762_s1 = scalar_lea.vmem %s3667_s4, %s2419_s30  ;;  %s3669_s4 = sld [smem:[#allocation23_spill]] }
  0x42   : > { %2644 = vmatprep.subr.bf16.mxu1 %v3012_v0  ;;  %v3244_v11 = vld [vmem:[%s762_s1] sm:$0xff]  ;;  %v2841_v14 = vld [vmem:[%s3668_s7 + $0x8] sm:$0xff]   ;;  %s2418_s1 = sshll.u32 %s752_s8, 3 }
  0x43   : > { %2623 = vmatmul.mubr.msk.bf16.vlgmr.msra.gmra.mxu0 %vm779_vm2, %v770_v4  ;;  %v2842_v18 = vld [vmem:[%s3668_s7] sm:$0xff]   ;;  %s754_s30 = scalar_lea.vmem [#allocation5], %s2418_s1 }
  0x44   : > { %2627 = vmatpush3.bf16.msra.mxu0 %v2837_v5  ;;  %2630 = vmatprep.mubr.msk.bf16.mxu0 %vm3013_vm0, %v3012_v0  ;;  %v2423_v31 = vld [vmem:[%s3670_s0] ss:$0 sm:$0xff]  ;;  %s2329_s27 = sshll.u32 %s754_s30, 4  ;;  %s2330_s27 = int_to_ptr.vmem [resolvable:$true] %s2329_s27 }
  0x45   : > { %2628 = vmatprep.subr.bf16.mxu0 %v3012_v0  ;;  %2645 = vmatpush3.bf16.msra.mxu1 %v2840_v8  ;;  %s2550_s2 = sshll.u32 %s3672_s28, 7  ;;  %s3015_s28 = smov [#allocation5]  }
  0x46   : > { %2782 = vmatprep.subr.msk.bf16.mxu1 %vm783_vm1, %v3294_v45  ;;  %s2949_s1 = sshll.u32 %s3015_s28, 4  ;;  %s2950_s1 = int_to_ptr.vmem [resolvable:$false] %s2949_s1 }
  0x47   : > { %v2427_v29 = vld [vmem:[%s3669_s4] ss:$0 sm:$0xff]  ;;  %p2952_p13 = scmp.lt.s32.totalorder %s2330_s27, %s2950_s1 }
  0x48   : > { %2629 = vmatpush3.bf16.msra.mxu0 %v2839_v7 }
  0x49   : > { %2634 = vmatprep.subr.bf16.mxu0 %v3012_v0 }
 0x103   : > { %v821_v10 = vpop.f32.mrf.mxu0 }
 0x104   : > { %v3246_v12 = vadd.f32 %v2421_v9, %v821_v10 }
 0x105   : > { %v2624_v13 = vpop.f32.mrf.mxu0 }
 0x106   : > { %v828_v15 = vpack.c.bf16 %v3246_v12, %v3244_v11 }
 0x107   : > { %v824_v16 = vpop.f32.mrf.mxu0 }
 0x108   : > { %2631 = vmatmul.mubr.msk.bf16.vlgmr.msra.gmra.mxu0 %vm852_vm3, %v828_v15  ;;  %2647 = vmatmul.mubr.msk.bf16.vlgmr.msra.gmra.mxu1 %vm852_vm3, %v828_v15 }
 0x109   : > { %2635 = vmatpush3.bf16.msra.mxu0 %v2841_v14  ;;  %v2625_v17 = vpop.f32.mrf.mxu0  ;;  %2638 = vmatprep.mubr.msk.bf16.mxu0 %vm3013_vm0, %v3012_v0 }
 0x10a   : > { %2636 = vmatprep.subr.bf16.mxu0 %v3012_v0  ;;  %2659 = vmatpush3.bf16.msra.mxu1 %v3300_v46 }
 0x10b   : > { %2672 = vmatprep.subr.bf16.mxu1 %v3012_v0 }
 0x10d   : > { %2637 = vmatpush3.bf16.msra.mxu0 %v2842_v18 }
 0x10e   : > { %2650 = vmatprep.subr.bf16.mxu0 %v3265_v19 }
 0x110   : > { %2639 = vmatmul.mubr.msk.bf16.vlgmr.msra.gmra.mxu0 %vm852_vm3, %v828_v15 }
 0x111   : > { %2651 = vmatpush3.bf16.msra.mxu0 %v3265_v19 }
 0x112   : > { %2652 = vmatprep.subr.bf16.mxu0 %v3272_v20 }
 0x115   : > { %2653 = vmatpush3.bf16.msra.mxu0 %v3272_v20 }
 0x116   : > { %2664 = vmatprep.subr.bf16.mxu0 %v3012_v0 }
 0x1c8   : > { %v890_v21 = vpop.f32.mrf.mxu0  ;;  %v3277_v22 = vpop.f32.mrf.mxu1 }
 0x1c9   : > { %v891_v35 = vadd.f32 %v2423_v31, %v890_v21 }
 0x1ca   : > { %v2632_v23 = vpop.f32.mrf.mxu0  ;;  %v2648_v24 = vpop.f32.mrf.mxu1 }
 0x1cb   : > { %v2845_v23 = vld [vmem:[%s3605_s10 + $0x8] sm:$0xff]   ;;  %v2846_v24 = vld [vmem:[%s3605_s10] sm:$0xff]  }
 0x1cc   : > { %v893_v25 = vpop.f32.mrf.mxu0  ;;  %v3279_v26 = vpop.f32.mrf.mxu1 }
 0x1cd   : > { %v894_v36 = vadd.f32 %v2423_v31, %v893_v25  ;;  %v2431_v25 = vld [vmem:[%s3671_s9] ss:$0 sm:$0xff] }
 0x1ce   : > { %v2633_v27 = vpop.f32.mrf.mxu0  ;;  %v2649_v28 = vpop.f32.mrf.mxu1 }
 0x1cf   : > { %v1019_v28 = vadd.f32 %v2431_v25, %v3277_v22  ;;  %v2441_v22 = vld [vmem:[%s3606_s11] ss:$0 sm:$0xff] }
 0x1d0   : > { %v954_v30 = vpop.f32.mrf.mxu0 }
 0x1d1   : > { %v955_v33 = vadd.f32 %v2427_v29, %v954_v30 }
 0x1d2   : > { %v2640_v32 = vpop.f32.mrf.mxu0 }
 0x1d3   : > { %v1025_v39 = vmul.f32 %v955_v33, %v891_v35  ;;  %v1028_v40 = vmul.f32 %v955_v33, %v894_v36 }
 0x1d4   : > { %v957_v34 = vpop.f32.mrf.mxu0 }
 0x1d5   : > { %v958_v37 = vadd.f32 %v2427_v29, %v957_v34  ;;  %v1022_v29 = vadd.f32 %v2431_v25, %v3279_v26  ;;  %v2854_v25 = vld [vmem:[%s3609_s14 + $0x10] sm:$0xff]  }
 0x1d6   : > { %v2641_v38 = vpop.f32.mrf.mxu0 }
 0x1d7   : > { %v1026_v41 = vmul.f32 %v958_v37, %v894_v36  ;;  %v1027_v42 = vmul.f32 %v958_v37, %v891_v35 }
 0x1d9   : > { %v1029_v43 = vpack.c.bf16 %v1026_v41, %v1025_v39  ;;  %v1030_v44 = vpack.c.bf16 %v1028_v40, %v1027_v42 }
 0x1db   : > { %2654 = vmatprep.mubr.msk.bf16.mxu0 %vm852_vm3, %v1029_v43 }
 0x1dc   : > { %2655 = vmatmul.mubr.msk.bf16.vlgmr.msra.gmra.mxu0 %vm852_vm3, %v1030_v44 }
 0x1dd   : > { %2668 = vmatprep.mubr.msk.bf16.mxu0 %vm3013_vm0, %v3012_v0  ;;  %2665 = vmatpush3.bf16.msra.mxu0 %v2845_v23 }
 0x1de   : > { %2666 = vmatprep.subr.bf16.mxu0 %v3012_v0 }
 0x1e1   : > { %2667 = vmatpush3.bf16.msra.mxu0 %v2846_v24 }
 0x1e2   : > { %2680 = vmatprep.subr.bf16.mxu0 %v3012_v0 }
 0x29c   : > { %v2656_v47 = vpop.f32.mrf.mxu0 }
 0x29e   : > { %v1083_v48 = vpop.f32.mrf.mxu0 }
 0x29f   : > { %v1098_v49 = vmax.f32 %v1083_v48, %v2656_v47 }
 0x2a0   : > { %v2657_v50 = vpop.f32.mrf.mxu0 }
 0x2a1   : > { %v1100_v51 = vsub.f32 %v1083_v48, %v1098_v49  ;;  %v1106_v52 = vsub.f32 %v2656_v47, %v1098_v49 }
 0x2a2   : > { %v1086_v53 = vpop.f32.mrf.mxu0 }
 0x2a3   : > { %v1102_v54 = vmul.f32 1.442695, %v1100_v51  ;;  %v1108_v55 = vmul.f32 1.442695, %v1106_v52  ;;  %v1099_v56 = vmax.f32 %v1086_v53, %v2657_v50 }
 0x2a5   : > { %2877 = vpow2.f32 %v1102_v54  ;;  %v1101_v57 = vsub.f32 %v1086_v53, %v1099_v56  ;;  %v1107_v58 = vsub.f32 %v2657_v50, %v1099_v56 }
 0x2a6   : > { %2879 = vpow2.f32 %v1108_v55 }
 0x2a7   : > { %v1104_v59 = vmul.f32 1.442695, %v1101_v57  ;;  %v1110_v60 = vmul.f32 1.442695, %v1107_v58 }
 0x2a9   : > { %2881 = vpow2.f32 %v1104_v59 }
 0x2aa   : > { %2883 = vpow2.f32 %v1110_v60  ;;  %v2848_v60 = vld [vmem:[%s3607_s12] sm:$0xff]  }
 0x2b2   : > { %v2878_v61 = vpop.eup %2877 }
 0x2b3   : > { %v2880_v62 = vpop.eup %2879 }
 0x2b4   : > { %v1112_v63 = vadd.f32 %v2880_v62, %v2878_v61 }
 0x2b6   : > { %v2882_v1 = vpop.eup %2881  ;;  %2885 = vrcp.f32 %v1112_v63 }
 0x2b7   : > { %v2884_v2 = vpop.eup %2883 }
 0x2b8   : > { %v1113_v3 = vadd.f32 %v2884_v2, %v2882_v1 }
 0x2ba   : > { %2887 = vrcp.f32 %v1113_v3 }
 0x2c3   : > { %v2886_v4 = vpop.eup %2885 }
 0x2c4   : > { %v1116_v5 = vmul.f32 %v2886_v4, %v1112_v63  ;;  %v2851_v63 = vld [vmem:[%s3609_s14 + $0x28] sm:$0xff]  }
 0x2c6   : > { %v1118_v6 = vsub.f32 2.0, %v1116_v5 }
 0x2c7   : > { %v2888_v7 = vpop.eup %2887 }
 0x2c8   : > { %v1117_v8 = vmul.f32 %v2888_v7, %v1113_v3  ;;  %v1120_v10 = vmul.f32 %v2886_v4, %v1118_v6 }
 0x2ca   : > { %v1119_v9 = vsub.f32 2.0, %v1117_v8  ;;  %v1122_v14 = vmul.f32 %v2878_v61, %v1120_v10  ;;  %v1124_v16 = vmul.f32 %v2880_v62, %v1120_v10  ;;  %v2849_v61 = vld [vmem:[%s3609_s14 + $0x38] sm:$0xff]   ;;  %v2850_v62 = vld [vmem:[%s3609_s14 + $0x30] sm:$0xff]  }
 0x2cc   : > { %v1121_v13 = vmul.f32 %v2888_v7, %v1119_v9 }
 0x2ce   : > { %v1123_v15 = vmul.f32 %v2882_v1, %v1121_v13  ;;  %v1125_v17 = vmul.f32 %v2884_v2, %v1121_v13  ;;  %v2852_v1 = vld [vmem:[%s3609_s14 + $0x20] sm:$0xff]   ;;  %v2853_v2 = vld [vmem:[%s3609_s14 + $0x18] sm:$0xff]  }
 0x2cf   : > { %v2445_v13 = vld [vmem:[%s3611_s16] ss:$0 sm:$0xff] }
 0x2d0   : > { %v1126_v18 = vpack.c.bf16 %v1123_v15, %v1122_v14  ;;  %v1127_v21 = vpack.c.bf16 %v1125_v17, %v1124_v16  ;;  %v2446_v17 = vld [vmem:[%s3612_s17] ss:$0 sm:$0xff] }
 0x2d2   : > { %2660 = vmatprep.mubr.msk.bf16.mxu1 %vm779_vm2, %v1126_v18 }
 0x2d3   : > { %2661 = vmatmul.mubr.msk.bf16.vlgmr.msra.gmra.mxu1 %vm779_vm2, %v1127_v21 }
 0x2d4   : > { %2676 = vmatprep.mubr.msk.bf16.mxu1 %vm3013_vm0, %v3012_v0 }
 0x393   : > { %v2662_v27 = vpop.f32.mrf.mxu1 }
 0x394   : > { %v1188_v31 = vmul.f32 %v2662_v27, %v1022_v29  ;;  %v2855_v27 = vld [vmem:[%s3609_s14 + $0x8] sm:$0xff]  }
 0x395   : > { %v1171_v30 = vpop.f32.mrf.mxu1 }
 0x396   : > { %v1186_v32 = vmul.f32 %v1171_v30, %v1019_v28 }
 0x397   : > { %v2663_v33 = vpop.f32.mrf.mxu1 }
 0x398   : > { %v1190_v34 = vadd.f32 %v1188_v31, %v1186_v32  ;;  %v1189_v36 = vmul.f32 %v2663_v33, %v1019_v28  ;;  %v2856_v28 = vld [vmem:[%s3609_s14] sm:$0xff]  }
 0x399   : > { %v1174_v35 = vpop.f32.mrf.mxu1 }
 0x39a   : > { %v1187_v37 = vmul.f32 %v1174_v35, %v1022_v29  ;;  %v2447_v29 = vld [vmem:[%s3608_s13] ss:$0 sm:$0xff] }
 0x39c   : > { %v1191_v38 = vadd.f32 %v1189_v36, %v1187_v37 }
 0x39e   : > { %v1192_v39 = vpack.c.bf16 %v1191_v38, %v1190_v34 }
 0x3a0   : > { %2669 = vmatmul.mubr.msk.bf16.vlgmr.msra.gmra.mxu0 %vm852_vm3, %v1192_v39 }
 0x3a1   : > { %2696 = vmatprep.mubr.msk.bf16.mxu0 %vm3013_vm0, %v3012_v0  ;;  %2681 = vmatpush3.bf16.msra.mxu0 %v2849_v61 }
 0x3a2   : > { %2682 = vmatprep.subr.bf16.mxu0 %v3012_v0 }
 0x3a5   : > { %2683 = vmatpush3.bf16.msra.mxu0 %v2850_v62 }
 0x3a6   : > { %2684 = vmatprep.subr.bf16.mxu0 %v3012_v0 }
 0x3a9   : > { %2685 = vmatpush3.bf16.msra.mxu0 %v2851_v63 }
 0x3aa   : > { %2686 = vmatprep.subr.bf16.mxu0 %v3012_v0 }
 0x3ad   : > { %2687 = vmatpush3.bf16.msra.mxu0 %v2852_v1 }
 0x3ae   : > { %2688 = vmatprep.subr.bf16.mxu0 %v3012_v0 }
 0x3b1   : > { %2689 = vmatpush3.bf16.msra.mxu0 %v2853_v2 }
 0x3b2   : > { %2690 = vmatprep.subr.bf16.mxu0 %v3012_v0 }
 0x3b5   : > { %2691 = vmatpush3.bf16.msra.mxu0 %v2854_v25  ;;  %v2476_v25 = vld [vmem:[%s3669_s4 + $0x1] ss:$0 sm:$0xff] }
 0x3b6   : > { %2692 = vmatprep.subr.bf16.mxu0 %v3012_v0 }
 0x3b9   : > { %2693 = vmatpush3.bf16.msra.mxu0 %v2855_v27 }
 0x3ba   : > { %2694 = vmatprep.subr.bf16.mxu0 %v3012_v0 }
 0x3bd   : > { %2695 = vmatpush3.bf16.msra.mxu0 %v2856_v28  ;;  %v2467_v28 = vld [vmem:[%s3670_s0 + $0x1] ss:$0 sm:$0xff]  ;;  %s3674_s0 = sld [smem:[#allocation26_spill]] }
 0x3be   : > { %2783 = vmatprep.subr.msk.bf16.mxu0 %vm783_vm1, %v3294_v45  ;;  %v2451_v45 = vld [vmem:[%s3610_s15] ss:$0 sm:$0xff] }
 0x3c3   : > { %s3560_s4 = scalar_lea.hbm %s3674_s0, %s2550_s2 }
 0x460   : > { %v1253_v26 = vpop.f32.mrf.mxu0 }
 0x461   : > { %v1254_v40 = vadd.f32 %v2441_v22, %v1253_v26 }
 0x462   : > { %v2670_v41 = vpop.f32.mrf.mxu0 }
 0x463   : > { %v1260_v42 = vadd.f32 %v1254_v40, %v3244_v11 }
 0x464   : > { %v1256_v43 = vpop.f32.mrf.mxu0 }
 0x465   : > { %v1257_v44 = vadd.f32 %v2441_v22, %v1256_v43  ;;  %v1264_v47 = vsel %vm852_vm3, %v1260_v42, 0.0 }
 0x466   : > { %1265 = vadd.xlane.f32.xlu0 %v1264_v47  ;;  %v2671_v48 = vpop.f32.mrf.mxu0 }
 0x467   : > { %v1261_v49 = vadd.f32 %v1257_v44, %v3246_v12  ;;  %v2847_v12 = vld [vmem:[%s3607_s12 + $0x8] sm:$0xff]  }
 0x468   : > { %2673 = vmatpush3.bf16.msra.mxu1 %v2847_v12 }
 0x469   : > { %v1267_v50 = vsel %vm852_vm3, %v1261_v49, 0.0  ;;  %2674 = vmatprep.subr.bf16.mxu1 %v3012_v0 }
 0x46a   : > { %1268 = vadd.xlane.f32.xlu0 %v1267_v50 }
 0x46c   : > { %2675 = vmatpush3.bf16.msra.mxu1 %v2848_v60 }
 0x46d   : > { %2700 = vmatprep.subr.bf16.mxu1 %v3012_v0 }
 0x4ef   : > { %v1266_v51 = vpop.xlane.xlu0 %1265 }
 0x4f0   : > { %v1271_v52 = vmul.f32 0.03125, %v1266_v51 }
 0x4f2   : > { %v1273_v53 = vsub.f32 %v1260_v42, %v1271_v52 }
 0x4f3   : > { %v1269_v54 = vpop.xlane.xlu0 %1268 }
 0x4f4   : > { %v1272_v55 = vmul.f32 0.03125, %v1269_v54  ;;  %v1275_v56 = vmul.f32 %v1273_v53, %v1273_v53 }
 0x4f6   : > { %v1274_v57 = vsub.f32 %v1261_v49, %v1272_v55  ;;  %v1277_v11 = vsel %vm852_vm3, %v1275_v56, 0.0 }
 0x4f7   : > { %1278 = vadd.xlane.f32.xlu1 %v1277_v11  ;;  %v2857_v11 = vld [vmem:[%s3665_s24 + $0x18] sm:$0xff]  }
 0x4f8   : > { %v1276_v58 = vmul.f32 %v1274_v57, %v1274_v57 }
 0x4fa   : > { %v1280_v59 = vsel %vm852_vm3, %v1276_v58, 0.0  ;;  %v2858_v58 = vld [vmem:[%s3665_s24 + $0x10] sm:$0xff]  }
 0x4fb   : > { %1281 = vadd.xlane.f32.xlu1 %v1280_v59 }
 0x580   : > { %v1279_v3 = vpop.xlane.xlu1 %1278 }
 0x581   : > { %v1283_v4 = vmul.f32 0.03125, %v1279_v3  ;;  %v2460_v3 = vld [vmem:[%s3613_s18] ss:$0 sm:$0xff] }
 0x583   : > { %v1285_v5 = vadd.f32 1e-05, %v1283_v4 }
 0x584   : > { %v1282_v6 = vpop.xlane.xlu1 %1281 }
 0x585   : > { %2889 = vrsqrt.f32 %v1285_v5  ;;  %v1284_v7 = vmul.f32 0.03125, %v1282_v6 }
 0x587   : > { %v1286_v8 = vadd.f32 1e-05, %v1284_v7  ;;  %v2461_v7 = vld [vmem:[%s3614_s19] ss:$0 sm:$0xff] }
 0x589   : > { %2891 = vrsqrt.f32 %v1286_v8 }
 0x592   : > { %v2890_v9 = vpop.eup %2889 }
 0x593   : > { %v1289_v10 = vmul.f32 %v2890_v9, %v1273_v53 }
 0x595   : > { %v1297_v16 = vmul.f32 %v2445_v13, %v1289_v10 }
 0x596   : > { %v2892_v14 = vpop.eup %2891 }
 0x597   : > { %v1290_v15 = vmul.f32 %v2892_v14, %v1274_v57  ;;  %v1305_v21 = vadd.f32 %v2446_v17, %v1297_v16  ;;  %v2861_v16 = vld [vmem:[%s3666_s6 + $0x18] sm:$0xff]  }
 0x599   : > { %v1298_v18 = vmul.f32 %v2445_v13, %v1290_v15  ;;  %v2859_v13 = vld [vmem:[%s3668_s7 + $0x18] sm:$0xff]   ;;  %v2860_v15 = vld [vmem:[%s3668_s7 + $0x10] sm:$0xff]   ;;  %s2951_s7 = scalar_lea.vmem %s2950_s1, 256 }
 0x59b   : > { %v1306_v23 = vadd.f32 %v2446_v17, %v1298_v18  ;;  %v2862_v17 = vld [vmem:[%s3666_s6 + $0x10] sm:$0xff]   ;;  %s2316_s6 = scalar_lea.sflag [#allocation4], %s752_s8 }
 0x59d   : > { %v1307_v24 = vpack.c.bf16 %v1306_v23, %v1305_v21 }
 0x59f   : > { %2677 = vmatmul.mubr.msk.bf16.vlgmr.msra.gmra.mxu1 %vm852_vm3, %v1307_v24 }
 0x5a0   : > { %2704 = vmatprep.mubr.msk.bf16.mxu1 %vm3013_vm0, %v3012_v0  ;;  %2701 = vmatpush3.bf16.msra.mxu1 %v2857_v11 }
 0x5a1   : > { %2702 = vmatprep.subr.bf16.mxu1 %v3012_v0 }
 0x5a4   : > { %2703 = vmatpush3.bf16.msra.mxu1 %v2858_v58 }
 0x5a5   : > { %2708 = vmatprep.subr.bf16.mxu1 %v3012_v0 }
 0x65f   : > { %v1368_v30 = vpop.f32.mrf.mxu1 }
 0x660   : > { %v1369_v32 = vadd.f32 %v2447_v29, %v1368_v30 }
 0x661   : > { %v2678_v31 = vpop.f32.mrf.mxu1 }
 0x662   : > { %v1375_v36 = vmax.f32 %v1369_v32, 0.0 }
 0x663   : > { %v1371_v33 = vpop.f32.mrf.mxu1 }
 0x664   : > { %v1372_v34 = vadd.f32 %v2447_v29, %v1371_v33 }
 0x665   : > { %v2679_v35 = vpop.f32.mrf.mxu1 }
 0x666   : > { %v1376_v37 = vmax.f32 %v1372_v34, 0.0 }
 0x668   : > { %v1377_v38 = vpack.c.bf16 %v1376_v37, %v1375_v36 }
 0x66a   : > { %2697 = vmatmul.mubr.bf16.vlgmr.msra.gmra.mxu0 %v1377_v38 }
 0x66b   : > { %2733 = vmatpush3.bf16.msra.mxu0 %v3300_v46 }
 0x66c   : > { %2746 = vmatprep.subr.bf16.mxu0 %v3012_v0 }
 0x72a   : > { %v1483_v39 = vpop.f32.mrf.mxu0 }
 0x72b   : > { %v1484_v22 = vadd.f32 %v2451_v45, %v1483_v39 }
 0x72c   : > { %v2698_v26 = vpop.f32.mrf.mxu0 }
 0x72d   : > { %v1490_v40 = vadd.f32 %v1484_v22, %v1305_v21 }
 0x72e   : > { %v1486_v41 = vpop.f32.mrf.mxu0 }
 0x72f   : > { %v1487_v42 = vadd.f32 %v2451_v45, %v1486_v41  ;;  %v1494_v43 = vsel %vm852_vm3, %v1490_v40, 0.0 }
 0x730   : > { %1495 = vadd.xlane.f32.xlu0 %v1494_v43  ;;  %v2699_v44 = vpop.f32.mrf.mxu0 }
 0x731   : > { %v1491_v47 = vadd.f32 %v1487_v42, %v1306_v23 }
 0x733   : > { %v1497_v48 = vsel %vm852_vm3, %v1491_v47, 0.0 }
 0x734   : > { %1498 = vadd.xlane.f32.xlu1 %v1497_v48 }
 0x7b9   : > { %v1496_v46 = vpop.xlane.xlu0 %1495 }
 0x7ba   : > { %v1500_v49 = vmul.f32 0.03125, %v1496_v46 }
 0x7bc   : > { %v1502_v50 = vsub.f32 %v1490_v40, %v1500_v49 }
 0x7bd   : > { %v1499_v51 = vpop.xlane.xlu1 %1498 }
 0x7be   : > { %v1501_v52 = vmul.f32 0.03125, %v1499_v51  ;;  %v1504_v53 = vmul.f32 %v1502_v50, %v1502_v50 }
 0x7c0   : > { %v1503_v54 = vsub.f32 %v1491_v47, %v1501_v52  ;;  %v1506_v55 = vsel %vm852_vm3, %v1504_v53, 0.0 }
 0x7c1   : > { %1507 = vadd.xlane.f32.xlu0 %v1506_v55 }
 0x7c2   : > { %v1505_v56 = vmul.f32 %v1503_v54, %v1503_v54 }
 0x7c4   : > { %v1509_v57 = vsel %vm852_vm3, %v1505_v56, 0.0 }
 0x7c5   : > { %1510 = vadd.xlane.f32.xlu1 %v1509_v57 }
 0x84a   : > { %v1508_v59 = vpop.xlane.xlu0 %1507 }
 0x84b   : > { %v1512_v12 = vmul.f32 0.03125, %v1508_v59 }
 0x84d   : > { %v1514_v60 = vadd.f32 1e-05, %v1512_v12 }
 0x84e   : > { %v1511_v61 = vpop.xlane.xlu1 %1510 }
 0x84f   : > { %2893 = vrsqrt.f32 %v1514_v60  ;;  %v1513_v62 = vmul.f32 0.03125, %v1511_v61 }
 0x851   : > { %v1515_v63 = vadd.f32 1e-05, %v1513_v62 }
 0x853   : > { %2895 = vrsqrt.f32 %v1515_v63 }
 0x85c   : > { %v2894_v1 = vpop.eup %2893 }
 0x85d   : > { %v1518_v2 = vmul.f32 %v2894_v1, %v1502_v50 }
 0x85f   : > { %v1526_v6 = vmul.f32 %v2460_v3, %v1518_v2 }
 0x860   : > { %v2896_v4 = vpop.eup %2895 }
 0x861   : > { %v1519_v5 = vmul.f32 %v2896_v4, %v1503_v54  ;;  %v3409_v9 = vadd.f32 %v2461_v7, %v1526_v6 }
 0x863   : > { %v1527_v8 = vmul.f32 %v2460_v3, %v1519_v5 }
 0x865   : > { %v3411_v10 = vadd.f32 %v2461_v7, %v1527_v8 }
 0x867   : > { %v1536_v14 = vpack.c.bf16 %v3411_v10, %v3409_v9 }
 0x869   : > { %2705 = vmatmul.mubr.msk.bf16.vlgmr.msra.gmra.mxu1 %vm852_vm3, %v1536_v14 }
 0x86a   : > { %2709 = vmatpush3.bf16.msra.mxu1 %v2859_v13  ;;  %2712 = vmatprep.mubr.msk.bf16.mxu1 %vm3013_vm0, %v3012_v0 }
 0x86b   : > { %2710 = vmatprep.subr.bf16.mxu1 %v3012_v0 }
 0x86e   : > { %2711 = vmatpush3.bf16.msra.mxu1 %v2860_v15  ;;  %v2863_v15 = vld [vmem:[%s3605_s10 + $0x18] sm:$0xff]  }
 0x86f   : > { %2716 = vmatprep.subr.bf16.mxu1 %v3012_v0 }
 0x871   : > { %2713 = vmatmul.mubr.msk.bf16.vlgmr.msra.gmra.mxu1 %vm852_vm3, %v1536_v14 }
 0x872   : > { %2717 = vmatpush3.bf16.msra.mxu1 %v2861_v16  ;;  %2720 = vmatprep.mubr.msk.bf16.mxu1 %vm3013_vm0, %v3012_v0  ;;  %v2864_v16 = vld [vmem:[%s3605_s10 + $0x10] sm:$0xff]  }
 0x873   : > { %2718 = vmatprep.subr.bf16.mxu1 %v3012_v0 }
 0x876   : > { %2719 = vmatpush3.bf16.msra.mxu1 %v2862_v17  ;;  %v2485_v17 = vld [vmem:[%s3671_s9 + $0x1] ss:$0 sm:$0xff] }
 0x877   : > { %2724 = vmatprep.subr.bf16.mxu1 %v3265_v19 }
 0x879   : > { %2721 = vmatmul.mubr.msk.bf16.vlgmr.msra.gmra.mxu1 %vm852_vm3, %v1536_v14 }
 0x87a   : > { %2725 = vmatpush3.bf16.msra.mxu1 %v3265_v19 }
 0x87b   : > { %2726 = vmatprep.subr.bf16.mxu1 %v3272_v20 }
 0x87e   : > { %2727 = vmatpush3.bf16.msra.mxu1 %v3272_v20 }
 0x87f   : > { %2738 = vmatprep.subr.bf16.mxu1 %v3012_v0 }
 0x929   : > { %v1599_v18 = vpop.f32.mrf.mxu1 }
 0x92a   : > { %v1600_v31 = vadd.f32 %v2467_v28, %v1599_v18 }
 0x92b   : > { %v2706_v21 = vpop.f32.mrf.mxu1 }
 0x92d   : > { %v1602_v23 = vpop.f32.mrf.mxu1 }
 0x92e   : > { %v1603_v20 = vadd.f32 %v2467_v28, %v1602_v23 }
 0x92f   : > { %v2707_v24 = vpop.f32.mrf.mxu1 }
 0x931   : > { %v1665_v27 = vpop.f32.mrf.mxu1 }
 0x932   : > { %v1666_v29 = vadd.f32 %v2476_v25, %v1665_v27 }
 0x933   : > { %v2714_v19 = vpop.f32.mrf.mxu1 }
 0x934   : > { %v1738_v34 = vmul.f32 %v1666_v29, %v1600_v31  ;;  %v1741_v35 = vmul.f32 %v1666_v29, %v1603_v20 }
 0x935   : > { %v1668_v30 = vpop.f32.mrf.mxu1 }
 0x936   : > { %v1669_v32 = vadd.f32 %v2476_v25, %v1668_v30 }
 0x937   : > { %v2715_v33 = vpop.f32.mrf.mxu1 }
 0x938   : > { %v1739_v36 = vmul.f32 %v1669_v32, %v1603_v20  ;;  %v1740_v37 = vmul.f32 %v1669_v32, %v1600_v31  ;;  %v2498_v33 = vld [vmem:[%s3606_s11 + $0x1] ss:$0 sm:$0xff] }
 0x939   : > { %v1731_v38 = vpop.f32.mrf.mxu1 }
 0x93a   : > { %v1742_v45 = vpack.c.bf16 %v1739_v36, %v1738_v34  ;;  %v1743_v39 = vpack.c.bf16 %v1741_v35, %v1740_v37  ;;  %v1732_v21 = vadd.f32 %v2485_v17, %v1731_v38 }
 0x93b   : > { %v2722_v22 = vpop.f32.mrf.mxu1 }
 0x93c   : > { %2728 = vmatprep.mubr.msk.bf16.mxu1 %vm852_vm3, %v1742_v45 }
 0x93d   : > { %v1734_v26 = vpop.f32.mrf.mxu1  ;;  %2729 = vmatmul.mubr.msk.bf16.vlgmr.msra.gmra.mxu1 %vm852_vm3, %v1743_v39 }
 0x93e   : > { %2742 = vmatprep.mubr.msk.bf16.mxu1 %vm3013_vm0, %v3012_v0  ;;  %2739 = vmatpush3.bf16.msra.mxu1 %v2863_v15  ;;  %v1735_v23 = vadd.f32 %v2485_v17, %v1734_v26  ;;  %v2874_v15 = vld [vmem:[%s3609_s14 + $0x40] sm:$0xff]  }
 0x93f   : > { %v2723_v40 = vpop.f32.mrf.mxu1  ;;  %2740 = vmatprep.subr.bf16.mxu1 %v3012_v0 }
 0x942   : > { %2741 = vmatpush3.bf16.msra.mxu1 %v2864_v16  ;;  %v2511_v16 = vld [vmem:[%s3608_s13 + $0x1] ss:$0 sm:$0xff] }
 0x943   : > { %2754 = vmatprep.subr.bf16.mxu1 %v3012_v0 }
 0x9fd   : > { %v2730_v41 = vpop.f32.mrf.mxu1 }
 0x9ff   : > { %v1784_v42 = vpop.f32.mrf.mxu1 }
 0xa00   : > { %v1799_v43 = vmax.f32 %v1784_v42, %v2730_v41 }
 0xa01   : > { %v2731_v44 = vpop.f32.mrf.mxu1 }
 0xa02   : > { %v1801_v47 = vsub.f32 %v1784_v42, %v1799_v43  ;;  %v1807_v48 = vsub.f32 %v2730_v41, %v1799_v43 }
 0xa03   : > { %v1787_v46 = vpop.f32.mrf.mxu1 }
 0xa04   : > { %v1803_v49 = vmul.f32 1.442695, %v1801_v47  ;;  %v1809_v50 = vmul.f32 1.442695, %v1807_v48  ;;  %v1800_v51 = vmax.f32 %v1787_v46, %v2731_v44 }
 0xa06   : > { %2897 = vpow2.f32 %v1803_v49  ;;  %v1802_v52 = vsub.f32 %v1787_v46, %v1800_v51  ;;  %v1808_v53 = vsub.f32 %v2731_v44, %v1800_v51  ;;  %v2866_v51 = vld [vmem:[%s3607_s12 + $0x10] sm:$0xff]  }
 0xa07   : > { %2899 = vpow2.f32 %v1809_v50 }
 0xa08   : > { %v1805_v54 = vmul.f32 1.442695, %v1802_v52  ;;  %v1811_v55 = vmul.f32 1.442695, %v1808_v53  ;;  %v2867_v52 = vld [vmem:[%s3609_s14 + $0x78] sm:$0xff]   ;;  %v2868_v53 = vld [vmem:[%s3609_s14 + $0x70] sm:$0xff]  }
 0xa0a   : > { %2901 = vpow2.f32 %v1805_v54  ;;  %v2869_v54 = vld [vmem:[%s3609_s14 + $0x68] sm:$0xff]  }
 0xa0b   : > { %2903 = vpow2.f32 %v1811_v55  ;;  %v2870_v55 = vld [vmem:[%s3609_s14 + $0x60] sm:$0xff]  }
 0xa13   : > { %v2898_v56 = vpop.eup %2897 }
 0xa14   : > { %v2900_v57 = vpop.eup %2899 }
 0xa15   : > { %v1813_v11 = vadd.f32 %v2900_v57, %v2898_v56 }
 0xa17   : > { %v2902_v58 = vpop.eup %2901  ;;  %2905 = vrcp.f32 %v1813_v11 }
 0xa18   : > { %v2904_v59 = vpop.eup %2903 }
 0xa19   : > { %v1814_v12 = vadd.f32 %v2904_v59, %v2902_v58 }
 0xa1b   : > { %2907 = vrcp.f32 %v1814_v12 }
 0xa24   : > { %v2906_v60 = vpop.eup %2905 }
 0xa25   : > { %v1817_v61 = vmul.f32 %v2906_v60, %v1813_v11 }
 0xa27   : > { %v1819_v62 = vsub.f32 2.0, %v1817_v61 }
 0xa28   : > { %v2908_v63 = vpop.eup %2907 }
 0xa29   : > { %v1818_v1 = vmul.f32 %v2908_v63, %v1814_v12  ;;  %v1821_v3 = vmul.f32 %v2906_v60, %v1819_v62 }
 0xa2b   : > { %v1820_v2 = vsub.f32 2.0, %v1818_v1  ;;  %v1823_v5 = vmul.f32 %v2898_v56, %v1821_v3  ;;  %v1825_v7 = vmul.f32 %v2900_v57, %v1821_v3  ;;  %v2871_v56 = vld [vmem:[%s3609_s14 + $0x58] sm:$0xff]  }
 0xa2d   : > { %v1822_v4 = vmul.f32 %v2908_v63, %v1820_v2  ;;  %v2504_v63 = vld [vmem:[%s3611_s16 + $0x1] ss:$0 sm:$0xff] }
 0xa2f   : > { %v1824_v6 = vmul.f32 %v2902_v58, %v1822_v4  ;;  %v1826_v8 = vmul.f32 %v2904_v59, %v1822_v4  ;;  %v2505_v4 = vld [vmem:[%s3612_s17 + $0x1] ss:$0 sm:$0xff] }
 0xa31   : > { %v1827_v13 = vpack.c.bf16 %v1824_v6, %v1823_v5  ;;  %v1828_v14 = vpack.c.bf16 %v1826_v8, %v1825_v7 }
 0xa33   : > { %2734 = vmatprep.mubr.msk.bf16.mxu0 %vm779_vm2, %v1827_v13  ;;  %v2872_v13 = vld [vmem:[%s3609_s14 + $0x50] sm:$0xff]  }
 0xa34   : > { %2735 = vmatmul.mubr.msk.bf16.vlgmr.msra.gmra.mxu0 %vm779_vm2, %v1828_v14  ;;  %v2873_v14 = vld [vmem:[%s3609_s14 + $0x48] sm:$0xff]  }
 0xa35   : > { %2750 = vmatprep.mubr.msk.bf16.mxu0 %vm3013_vm0, %v3012_v0 }
 0xaf4   : > { %v2736_v18 = vpop.f32.mrf.mxu0 }
 0xaf5   : > { %v1886_v25 = vmul.f32 %v2736_v18, %v1735_v23 }
 0xaf6   : > { %v1869_v24 = vpop.f32.mrf.mxu0 }
 0xaf7   : > { %v1884_v27 = vmul.f32 %v1869_v24, %v1732_v21 }
 0xaf8   : > { %v2737_v28 = vpop.f32.mrf.mxu0 }
 0xaf9   : > { %v1888_v19 = vadd.f32 %v1886_v25, %v1884_v27  ;;  %v1887_v30 = vmul.f32 %v2737_v28, %v1732_v21 }
 0xafa   : > { %v1872_v29 = vpop.f32.mrf.mxu0 }
 0xafb   : > { %v1885_v31 = vmul.f32 %v1872_v29, %v1735_v23 }
 0xafd   : > { %v1889_v20 = vadd.f32 %v1887_v30, %v1885_v31  ;;  %v2532_v31 = vld [vmem:[%s3610_s15 + $0x1] ss:$0 sm:$0xff] }
 0xaff   : > { %v1890_v32 = vpack.c.bf16 %v1889_v20, %v1888_v19 }
 0xb01   : > { %2743 = vmatmul.mubr.msk.bf16.vlgmr.msra.gmra.mxu1 %vm852_vm3, %v1890_v32 }
 0xb02   : > { %2770 = vmatprep.mubr.msk.bf16.mxu1 %vm3013_vm0, %v3012_v0  ;;  %2755 = vmatpush3.bf16.msra.mxu1 %v2867_v52 }
 0xb03   : > { %2756 = vmatprep.subr.bf16.mxu1 %v3012_v0 }
 0xb06   : > { %2757 = vmatpush3.bf16.msra.mxu1 %v2868_v53 }
 0xb07   : > { %2758 = vmatprep.subr.bf16.mxu1 %v3012_v0 }
 0xb0a   : > { %2759 = vmatpush3.bf16.msra.mxu1 %v2869_v54 }
 0xb0b   : > { %2760 = vmatprep.subr.bf16.mxu1 %v3012_v0 }
 0xb0e   : > { %2761 = vmatpush3.bf16.msra.mxu1 %v2870_v55 }
 0xb0f   : > { %2762 = vmatprep.subr.bf16.mxu1 %v3012_v0 }
 0xb12   : > { %2763 = vmatpush3.bf16.msra.mxu1 %v2871_v56 }
 0xb13   : > { %2764 = vmatprep.subr.bf16.mxu1 %v3012_v0 }
 0xb16   : > { %2765 = vmatpush3.bf16.msra.mxu1 %v2872_v13 }
 0xb17   : > { %2766 = vmatprep.subr.bf16.mxu1 %v3012_v0 }
 0xb1a   : > { %2767 = vmatpush3.bf16.msra.mxu1 %v2873_v14 }
 0xb1b   : > { %2768 = vmatprep.subr.bf16.mxu1 %v3012_v0 }
 0xb1e   : > { %2769 = vmatpush3.bf16.msra.mxu1 %v2874_v15 }
 0xbc1   : > { %v1953_v34 = vpop.f32.mrf.mxu1 }
 0xbc2   : > { %v1954_v35 = vadd.f32 %v2498_v33, %v1953_v34 }
 0xbc3   : > { %v2744_v36 = vpop.f32.mrf.mxu1 }
 0xbc4   : > { %v1960_v37 = vadd.f32 %v1954_v35, %v3409_v9 }
 0xbc5   : > { %v1956_v38 = vpop.f32.mrf.mxu1 }
 0xbc6   : > { %v1957_v45 = vadd.f32 %v2498_v33, %v1956_v38  ;;  %v1966_v39 = vsel %vm852_vm3, %v1960_v37, 0.0 }
 0xbc7   : > { %1967 = vadd.xlane.f32.xlu0 %v1966_v39  ;;  %v2745_v22 = vpop.f32.mrf.mxu1 }
 0xbc8   : > { %v1961_v26 = vadd.f32 %v1957_v45, %v3411_v10  ;;  %v2865_v10 = vld [vmem:[%s3607_s12 + $0x18] sm:$0xff]   ;;  %v2875_v22 = vld [vmem:[%s3615_s20 + $0x8] sm:$0xff]  }
 0xbc9   : > { %2747 = vmatpush3.bf16.msra.mxu0 %v2865_v10 }
 0xbca   : > { %v1969_v40 = vsel %vm852_vm3, %v1961_v26, 0.0  ;;  %2748 = vmatprep.subr.bf16.mxu0 %v3012_v0 }
 0xbcb   : > { %1970 = vadd.xlane.f32.xlu1 %v1969_v40 }
 0xbcd   : > { %2749 = vmatpush3.bf16.msra.mxu0 %v2866_v51 }
 0xbce   : > { %2774 = vmatprep.subr.bf16.mxu0 %v3012_v0 }
 0xc50   : > { %v1968_v41 = vpop.xlane.xlu0 %1967 }
 0xc51   : > { %v1972_v42 = vmul.f32 0.03125, %v1968_v41 }
 0xc53   : > { %v1974_v43 = vsub.f32 %v1960_v37, %v1972_v42 }
 0xc54   : > { %v1971_v44 = vpop.xlane.xlu1 %1970 }
 0xc55   : > { %v1973_v47 = vmul.f32 0.03125, %v1971_v44  ;;  %v1976_v48 = vmul.f32 %v1974_v43, %v1974_v43  ;;  %v2543_v44 = vld [vmem:[%s3613_s18 + $0x1] ss:$0 sm:$0xff] }
 0xc57   : > { %v1975_v46 = vsub.f32 %v1961_v26, %v1973_v47  ;;  %v1978_v9 = vsel %vm852_vm3, %v1976_v48, 0.0  ;;  %v2876_v26 = vld [vmem:[%s3615_s20] sm:$0xff]  }
 0xc58   : > { %1979 = vadd.xlane.f32.xlu0 %v1978_v9  ;;  %v2544_v48 = vld [vmem:[%s3614_s19 + $0x1] ss:$0 sm:$0xff] }
 0xc59   : > { %v1977_v49 = vmul.f32 %v1975_v46, %v1975_v46 }
 0xc5b   : > { %v1981_v50 = vsel %vm852_vm3, %v1977_v49, 0.0 }
 0xc5c   : > { %1982 = vadd.xlane.f32.xlu1 %v1981_v50 }
 0xce1   : > { %v1980_v57 = vpop.xlane.xlu0 %1979 }
 0xce2   : > { %v1984_v11 = vmul.f32 0.03125, %v1980_v57 }
 0xce4   : > { %v1986_v58 = vadd.f32 1e-05, %v1984_v11 }
 0xce5   : > { %v1983_v59 = vpop.xlane.xlu1 %1982 }
 0xce6   : > { %2909 = vrsqrt.f32 %v1986_v58  ;;  %v1985_v12 = vmul.f32 0.03125, %v1983_v59 }
 0xce8   : > { %v1987_v60 = vadd.f32 1e-05, %v1985_v12 }
 0xcea   : > { %2911 = vrsqrt.f32 %v1987_v60 }
 0xcf3   : > { %v2910_v61 = vpop.eup %2909 }
 0xcf4   : > { %v1990_v62 = vmul.f32 %v2910_v61, %v1974_v43 }
 0xcf6   : > { %v1998_v3 = vmul.f32 %v2504_v63, %v1990_v62 }
 0xcf7   : > { %v2912_v1 = vpop.eup %2911 }
 0xcf8   : > { %v1991_v2 = vmul.f32 %v2912_v1, %v1975_v46  ;;  %v2006_v6 = vadd.f32 %v2505_v4, %v1998_v3 }
 0xcfa   : > { %v1999_v5 = vmul.f32 %v2504_v63, %v1991_v2 }
 0xcfc   : > { %v2007_v7 = vadd.f32 %v2505_v4, %v1999_v5 }
 0xcfe   : > { %v2008_v8 = vpack.c.bf16 %v2007_v7, %v2006_v6 }
 0xd00   : > { %2751 = vmatmul.mubr.msk.bf16.vlgmr.msra.gmra.mxu0 %vm852_vm3, %v2008_v8 }
 0xd01   : > { %2778 = vmatprep.mubr.msk.bf16.mxu0 %vm3013_vm0, %v3012_v0  ;;  %2775 = vmatpush3.bf16.msra.mxu0 %v2875_v22 }
 0xd02   : > { %2776 = vmatprep.subr.bf16.mxu0 %v3012_v0  ;;  %v2545_v0 = vld [vmem:[%s3616_s21] ss:$0 sm:$0xff] }
 0xd05   : > { %2777 = vmatpush3.bf16.msra.mxu0 %v2876_v26 }
 0xdc0   : > { %v2071_v17 = vpop.f32.mrf.mxu0 }
 0xdc1   : > { %v2072_v21 = vadd.f32 %v2511_v16, %v2071_v17 }
 0xdc2   : > { %v2752_v18 = vpop.f32.mrf.mxu0 }
 0xdc3   : > { %v2078_v27 = vmax.f32 %v2072_v21, 0.0 }
 0xdc4   : > { %v2074_v23 = vpop.f32.mrf.mxu0 }
 0xdc5   : > { %v2075_v24 = vadd.f32 %v2511_v16, %v2074_v23 }
 0xdc6   : > { %v2753_v25 = vpop.f32.mrf.mxu0 }
 0xdc7   : > { %v2079_v28 = vmax.f32 %v2075_v24, 0.0 }
 0xdc9   : > { %v2080_v19 = vpack.c.bf16 %v2079_v28, %v2078_v27 }
 0xdcb   : > { %2771 = vmatmul.mubr.bf16.vlgmr.msra.gmra.mxu1 %v2080_v19 }
 0xe8b   : > { %v2188_v29 = vpop.f32.mrf.mxu1 }
 0xe8d   : > { %v2772_v30 = vpop.f32.mrf.mxu1 }
 0xe8f   : > { %v2190_v20 = vpop.f32.mrf.mxu1 }
 0xe90   : > { %v2191_v32 = vadd.f32 %v2532_v31, %v2190_v20 }
 0xe91   : > { %v2773_v33 = vpop.f32.mrf.mxu1 }
 0xe92   : > { %v2194_v34 = vadd.f32 %v2191_v32, %v2007_v7 }
 0xe94   : > { %v2199_v35 = vsel %vm852_vm3, %v2194_v34, 0.0 }
 0xe95   : > { %2200 = vadd.xlane.f32.xlu0 %v2199_v35 }
 0xf1e   : > { %v2201_v36 = vpop.xlane.xlu0 %2200 }
 0xf1f   : > { %v2202_v37 = vmul.f32 0.03125, %v2201_v36 }
 0xf21   : > { %v2203_v38 = vsub.f32 %v2194_v34, %v2202_v37 }
 0xf23   : > { %v2204_v45 = vmul.f32 %v2203_v38, %v2203_v38 }
 0xf25   : > { %v2205_v39 = vsel %vm852_vm3, %v2204_v45, 0.0 }
 0xf26   : > { %2206 = vadd.xlane.f32.xlu1 %v2205_v39 }
 0xfaf   : > { %v2207_v40 = vpop.xlane.xlu1 %2206 }
 0xfb0   : > { %v2208_v41 = vmul.f32 0.03125, %v2207_v40 }
 0xfb2   : > { %v2209_v42 = vadd.f32 1e-05, %v2208_v41 }
 0xfb4   : > { %2913 = vrsqrt.f32 %v2209_v42 }
 0xfc1   : > { %v2914_v43 = vpop.eup %2913 }
 0xfc2   : > { %v2211_v47 = vmul.f32 %v2914_v43, %v2203_v38 }
 0xfc4   : > { %v2218_v46 = vmul.f32 %v2543_v44, %v2211_v47 }
 0xfc6   : > { %v2225_v9 = vadd.f32 %v2544_v48, %v2218_v46 }
 0xfc8   : > { %v2226_v49 = vpack.c.bf16 %v2225_v9, %v2225_v9 }
 0xfca   : > { %2779 = vmatmul.mubr.msk.bf16.vlgmr.msra.gmra.mxu0 %vm852_vm3, %v2226_v49 }
0x108a   : > { %v2287_v50 = vpop.f32.mrf.mxu0 }
0x108b   : > { %v2288_v10 = vadd.f32 %v2545_v0, %v2287_v50 }
0x108c   : > { %v2780_v51 = vpop.f32.mrf.mxu0 }
0x108d   : > { %v2293_v52 = vsel %vm779_vm2, %v2288_v10, -inf }
0x108e   : > { %2294 = vmax.xlane.f32.xlu0 %v2293_v52  ;;  %v2290_v53 = vpop.f32.mrf.mxu0 }
0x1090   : > { %v2781_v54 = vpop.f32.mrf.mxu0 }
0x1117   : > { %v2295_v55 = vpop.xlane.xlu0 %2294 }
0x1118   : > { %v2296_v56 = vsub.f32 %v2288_v10, %v2295_v55 }
0x111a   : > { %v2297_v57 = vmul.f32 1.442695, %v2296_v56 }
0x111c   : > { %2915 = vpow2.f32 %v2297_v57 }
0x1129   : > { %v2916_v11 = vpop.eup %2915 }
0x112a   : > { %v2299_v58 = vsel %vm779_vm2, %v2916_v11, 0.0 }
0x112b   : > { %2300 = vadd.xlane.f32.xlu1 %v2299_v58 }
0x11b4   : > { %v2301_v59 = vpop.xlane.xlu1 %2300 }
0x11b5   : > { %2917 = vrcp.f32 %v2301_v59 }
0x11c2   : > { %v2918_v12 = vpop.eup %2917 }
0x11c3   : > { %v2303_v60 = vmul.f32 %v2918_v12, %v2301_v59 }
0x11c5   : > { %v2304_v61 = vsub.f32 2.0, %v2303_v60 }
0x11c7   : > { %v2305_v62 = vmul.f32 %v2918_v12, %v2304_v61 }
0x11c9   : > { %v2306_v63 = vmul.f32 %v2916_v11, %v2305_v62 }
0x11cb   : > { %2308 = vrot.lane.b32.xlu0 %v2306_v63, %s3014_s3  ;;  %s2945_s3 = scalar_lea.vmem %s2330_s27, 128 }
0x11cc   : > { %p2946_p9 = scmp.ne.s32.totalorder %s2330_s27, %s2945_s3  ;;  %p2953_p0 = scmp.lt.s32.totalorder %s2951_s7, %s2945_s3 }
0x11ce   : > { %p2947_p10 = pnand %p2946_p9, %p3179_p5  ;;  %p2954_p1 = por %p2953_p0, %p2952_p13 }
0x11d0   : > { %p2948_p12 = pneg %p2947_p10 }
0x11d2   : > { %p2955_p2 = pnand %p2954_p1, %p2948_p12 }
0x123d   : > { %v2309_v1 = vpop.permute.xlu0 %2308 }
0x123e   : > { %v2311_v2 = vsel %vm852_vm3, %v2225_v9, %v2309_v1 }
0x123f   : > { %v2313_v3 = vsel %vm2312_vm4, %v2311_v2, 0.0 }
0x1240   : > { %2314 = vst [vmem:[%s754_s30] sm:$0xff] %v2313_v3 }
0x1241   : > { %2958 = shalt.err (!%p2955_p2)
}
0x1242   : > { %s2959_s2 = scalar_lea.hbm %s3560_s4, 128  ;;  %s2963_s29 = scalar_lea.hbm %s3674_s0, 256 }
0x1243   : > { %p2960_p3 = scmp.ne.s32.totalorder %s3560_s4, %s2959_s2  ;;  %p2964_p8 = scmp.lt.s32.totalorder %s3560_s4, %s3674_s0 }
0x1244   : > { %p2965_p11 = scmp.lt.s32.totalorder %s2963_s29, %s2959_s2 }
0x1245   : > { %p2961_p4 = pnand %p2960_p3, %p3179_p5 }
0x1246   : > { %p2966_p9 = por %p2965_p11, %p2964_p8 }
0x1247   : > { %p2962_p7 = pneg %p2961_p4 }
0x1249   : > { %p2967_p10 = pnand %p2966_p9, %p2962_p7 }
0x124b   : > { %2970 = shalt.err (!%p2967_p10)
}
0x124c   : > { %2788 = dma.vmem_to_hbm [thread:$0]  (%p3179_p5), %s2330_s27, 128, %s3560_s4, %s2316_s6  }
0x124d PF: > { %s3675_s7 = sld [smem:[#allocation10_spill]] }
0x124e   : > { %s3676_s3 = sld [smem:[#allocation8_spill]] }
0x1253   : > { %p2800_p12 = scmp.ge.s32.totalorder %s3675_s7, 2 }
0x1254   : > { %s2341_s9 = sand.u32 1, %s3676_s3  }
0x1255   : > { %p2795_p13 = pnand %p2800_p12, %p3183_p6  ;;  %s2342_s8 = scalar_lea.sflag [#allocation4], %s2341_s9 }
0x1257   : > { %p2796_p0 = pneg %p2795_p13 }
0x1259   : > { %2992 = dma.done.wait (%p2796_p0), %s2342_s8, 128  }
0x125a   : > { %2994 = vsyncadd (%p2796_p0), %s2342_s8, 4294967168  ;;  %s3678_s28 = sld [smem:[#allocation12_spill]]  ;;  %s3681_s5 = smov %s3001_s26 }
0x125b   : > { %s3679_s2 = sld [smem:[#allocation9_spill]] }
0x125c   : > { %s3680_s27 = sld [smem:[#allocation13_spill]] }
0x1260   : > { %p35_p1 = scmp.ge.s32.totalorder %s3678_s28, 4  }
0x1261   : > { %s3682_s26 = smov %s3679_s2 }
0x1262   :  { %37 = sbr.rel (!%p35_p1) target bundleno = 16 (0x10), region = 175 }
0x1267   :  { %2347 = vsyncpa [#allocation3], 1 }
0x1268   :  { %2349 = vsyncpa [#allocation3 + $0x1], 1 }
0x1269   :  { %2350 = vsyncpa [#allocation4], 1 }
0x126a   :  { %2352 = vsyncpa [#allocation4 + $0x1], 1 }

</bundles_post_ra>
